<compile_context>
chip_gen: v7x
topology: tpu7x:2x2x1
jax: 0.10.0
libtpu: 0.0.40
codegen_flags: <defaults>
</compile_context>

<pallas_src>
import functools
import math

import jax
import jax.numpy as jnp
from jax import lax
from jax.experimental import pallas as pl
from jax.experimental.pallas import tpu as pltpu

LN_EPS = 1e-5
NEG_INF = -1e30                      # finite mask value: NaN-safe even for masked rows


@functools.lru_cache(maxsize=None)
def _vmem_limit_bytes():
    """Generation-aware scoped-VMEM budget: ~75% of physical VMEM per TensorCore
    (~96 MiB on v5e/v6e, ~48 MiB on v7x)."""
    try:
        cap = int(pltpu.get_tpu_info().vmem_capacity_bytes)
    except Exception:
        cap = 128 * 1024 * 1024
    return max(32 * 1024 * 1024, (cap * 3) // 4)


def _mosaic_params(dimension_semantics):
    return pltpu.CompilerParams(
        dimension_semantics=dimension_semantics,
        vmem_limit_bytes=_vmem_limit_bytes())


def _const_spec(shape):
    """Fully resident block whose index never changes.  Single-buffer it when the
    installed Pallas supports per-BlockSpec buffer counts (halves resident-weight
    VMEM on v7x); otherwise fall back to the default double-buffered spec."""
    n = len(shape)
    index_map = lambda *_, _n=n: (0,) * _n
    try:
        return pl.BlockSpec(shape, index_map, pipeline_mode=pl.Buffered(1))
    except (TypeError, AttributeError):
        return pl.BlockSpec(shape, index_map)


def _pick_tile(n, candidates):
    for c in candidates:
        if c <= n and n % c == 0:
            return c
    return n


def _layernorm(x, g, b):
    mu = jnp.mean(x, axis=-1, keepdims=True)
    xc = x - mu
    var = jnp.mean(xc * xc, axis=-1, keepdims=True)
    return xc * lax.rsqrt(var + LN_EPS) * g + b


# ---------------------------------------------------------------------------
# Attention: LN1 + causal MHA + residual.  grid = (B, num_q_tiles).
# K/V for the whole sequence are projected once per batch element and cached
# head-major in VMEM scratch; each grid step processes one query row tile.
# ---------------------------------------------------------------------------
def _attn_kernel(num_heads, x_q_ref, x_ref, g_ref, b_ref, wqkv_ref, wo_ref, bo_ref,
                 o_ref, q_scr, k_scr, v_scr):
    H = num_heads
    qi = pl.program_id(1)
    _, TQ, D = x_q_ref.shape
    T = x_ref.shape[1]
    hs = D // H
    scale = 1.0 / math.sqrt(hs)

    # --- K / V for the full sequence: computed once per batch element (qi == 0),
    #     cached head-major (H, T, hs) and reused by every query tile. ---
    @pl.when(qi == 0)
    def _():
        xf = x_ref[0].astype(jnp.float32)                            # (T, D)
        hf = _layernorm(xf, g_ref[...], b_ref[...]).astype(jnp.bfloat16)
        kv = jnp.dot(hf, wqkv_ref[:, D:],                            # (T, 2D) = [K | V]
                     preferred_element_type=jnp.float32).astype(jnp.bfloat16)
        for h in range(H):                                           # static head split
            k_scr[h] = kv[:, h * hs:(h + 1) * hs]
            v_scr[h] = kv[:, D + h * hs:D + (h + 1) * hs]

    # --- Q projection for this query tile ---
    xq = x_q_ref[0].astype(jnp.float32)                              # (TQ, D)
    hq = _layernorm(xq, g_ref[...], b_ref[...]).astype(jnp.bfloat16)
    q = jnp.dot(hq, wqkv_ref[:, :D],
                preferred_element_type=jnp.float32).astype(jnp.bfloat16)
    for h in range(H):
        q_scr[h] = q[:, h * hs:(h + 1) * hs]

    qh = q_scr[...]                                                  # (H, TQ, hs) bf16
    kh = k_scr[...]                                                  # (H, T,  hs) bf16
    vh = v_scr[...]                                                  # (H, T,  hs) bf16

    # --- head-batched scores + causal softmax (f32) ---
    s = jnp.einsum('hqd,hkd->hqk', qh, kh,
                   preferred_element_type=jnp.float32) * scale       # (H, TQ, T)
    row = lax.broadcasted_iota(jnp.int32, s.shape, 1) + qi * TQ
    col = lax.broadcasted_iota(jnp.int32, s.shape, 2)
    s = jnp.where(row >= col, s, NEG_INF)
    s = s - jnp.max(s, axis=-1, keepdims=True)
    p = jnp.exp(s)
    p = p / jnp.sum(p, axis=-1, keepdims=True)                       # exact softmax

    ctx = jnp.einsum('hqk,hkd->hqd', p.astype(jnp.bfloat16), vh,
                     preferred_element_type=jnp.float32)             # (H, TQ, hs)
    ctx = ctx.astype(jnp.bfloat16)

    # --- output projection: per-head (TQ, hs) @ (hs, D) accumulated into one
    #     full-width (TQ, D) f32 accumulator (no lane-axis concat). ---
    sa = jnp.zeros((TQ, D), jnp.float32)
    for h in range(H):
        sa = sa + jnp.dot(ctx[h], wo_ref[h], preferred_element_type=jnp.float32)
    sa = sa + bo_ref[...]

    o_ref[0] = (xq + sa).astype(o_ref.dtype)


def attention_layer(x, p, num_heads):
    B, T, D = x.shape
    hs = D // num_heads
    TQ = _pick_tile(T, (256, 128, 64, 32, 16, 8))
    nq = T // TQ
    return pl.pallas_call(
        functools.partial(_attn_kernel, num_heads),
        out_shape=jax.ShapeDtypeStruct((B, T, D), x.dtype),
        grid_spec=pltpu.PrefetchScalarGridSpec(
            num_scalar_prefetch=0,
            grid=(B, nq),
            in_specs=[
                pl.BlockSpec((1, TQ, D), lambda b, q: (b, q, 0)),    # x query rows
                pl.BlockSpec((1, T, D), lambda b, q: (b, 0, 0)),     # x full (K/V source, per-b resident)
                _const_spec((1, D)), _const_spec((1, D)),            # ln1 gamma / beta
                _const_spec((D, 3 * D)),                             # fused Wqkv (bf16)
                _const_spec((num_heads, hs, D)),                     # Wo as (H, hs, D) (bf16)
                _const_spec((1, D)),                                 # bo
            ],
            out_specs=pl.BlockSpec((1, TQ, D), lambda b, q: (b, q, 0)),
            scratch_shapes=[
                pltpu.VMEM((num_heads, TQ, hs), jnp.bfloat16),       # Q (head-major)
                pltpu.VMEM((num_heads, T, hs), jnp.bfloat16),        # K cache
                pltpu.VMEM((num_heads, T, hs), jnp.bfloat16),        # V cache
            ],
        ),
        compiler_params=_mosaic_params(("parallel", "arbitrary")),
    )(x, x, p["ln1_g"], p["ln1_b"], p["wqkv"], p["wo"], p["bo"])


# ---------------------------------------------------------------------------
# MLP: LN2 + Linear(D,4D) + ReLU + Linear(4D,D) + residual.
# grid = (row tiles, Dff tiles) so the FFN weights are streamed, never fully resident.
# ---------------------------------------------------------------------------
def _mlp_kernel(x_ref, g_ref, b_ref, w1_ref, b1_ref, w2_ref, b2_ref, o_ref,
                h_scr, acc_scr):
    k = pl.program_id(1)

    @pl.when(k == 0)
    def _():
        x = x_ref[...].astype(jnp.float32)
        h_scr[...] = _layernorm(x, g_ref[...], b_ref[...]).astype(h_scr.dtype)
        acc_scr[...] = jnp.zeros_like(acc_scr)

    f = jnp.dot(h_scr[...], w1_ref[...],
                preferred_element_type=jnp.float32) + b1_ref[...]
    f = jnp.maximum(f, 0.0).astype(jnp.bfloat16)
    acc_scr[...] += jnp.dot(f, w2_ref[...], preferred_element_type=jnp.float32)

    @pl.when(k == pl.num_programs(1) - 1)
    def _():
        o_ref[...] = (x_ref[...].astype(jnp.float32) + acc_scr[...]
                      + b2_ref[...]).astype(o_ref.dtype)


def mlp_layer(x2d, p):
    N, D = x2d.shape
    Dff = p["w1"].shape[1]
    TM = _pick_tile(N, (512, 256, 128, 64, 32, 16, 8))
    TF = _pick_tile(Dff, (1024, 512, 256, 128))
    return pl.pallas_call(
        _mlp_kernel,
        out_shape=jax.ShapeDtypeStruct((N, D), x2d.dtype),
        grid_spec=pltpu.PrefetchScalarGridSpec(
            num_scalar_prefetch=0,
            grid=(N // TM, Dff // TF),
            in_specs=[
                pl.BlockSpec((TM, D), lambda i, k: (i, 0)),          # x rows (resident over k)
                _const_spec((1, D)), _const_spec((1, D)),            # ln2 gamma / beta
                pl.BlockSpec((D, TF), lambda i, k: (0, k)),          # W1 tile (streamed, bf16)
                pl.BlockSpec((1, TF), lambda i, k: (0, k)),          # b1 tile
                pl.BlockSpec((TF, D), lambda i, k: (k, 0)),          # W2 tile (streamed, bf16)
                _const_spec((1, D)),                                 # b2
            ],
            out_specs=pl.BlockSpec((TM, D), lambda i, k: (i, 0)),
            scratch_shapes=[
                pltpu.VMEM((TM, D), jnp.bfloat16),                   # LN(x) cache
                pltpu.VMEM((TM, D), jnp.float32),                    # FFN accumulator
            ],
        ),
        compiler_params=_mosaic_params(("parallel", "arbitrary")),
    )(x2d, p["ln2_g"], p["ln2_b"], p["w1"], p["b1"], p["w2"], p["b2"])


# ---------------------------------------------------------------------------
# Final LayerNorm + lm_head + fused cross-entropy (per-row NLL), vocab-tiled.
# Logits are written back in bf16; the loss path stays f32 via online LSE.
# ---------------------------------------------------------------------------
def _head_loss_kernel(x_ref, g_ref, b_ref, w_ref, bias_ref, t_ref,
                      logits_ref, nll_ref, h_scr, m_scr, l_scr, tgt_scr):
    j = pl.program_id(1)                                 # vocab-tile index (reduction axis)
    TN = logits_ref.shape[-1]

    @pl.when(j == 0)
    def _():
        x = x_ref[...].astype(jnp.float32)               # (TM, D)
        h_scr[...] = _layernorm(x, g_ref[...], b_ref[...]).astype(h_scr.dtype)
        m_scr[...] = jnp.full_like(m_scr, NEG_INF)
        l_scr[...] = jnp.zeros_like(l_scr)
        tgt_scr[...] = jnp.zeros_like(tgt_scr)

    logits = jnp.dot(h_scr[...], w_ref[...],
                     preferred_element_type=jnp.float32) + bias_ref[...]
    logits_ref[...] = logits.astype(logits_ref.dtype)

    # online log-sum-exp across vocab tiles
    m_prev = m_scr[...]
    m_new = jnp.maximum(m_prev, jnp.max(logits, axis=-1, keepdims=True))
    l_scr[...] = (l_scr[...] * jnp.exp(m_prev - m_new)
                  + jnp.sum(jnp.exp(logits - m_new), axis=-1, keepdims=True))
    m_scr[...] = m_new

    # accumulate the target-class logit for this vocab tile
    t = t_ref[...]                                       # (TM, 1) int32
    col = lax.broadcasted_iota(jnp.int32, logits.shape, 1) + j * TN
    tgt_scr[...] += jnp.sum(jnp.where(col == t, logits, 0.0), axis=-1, keepdims=True)

    @pl.when(j == pl.num_programs(1) - 1)
    def _():
        nll_ref[...] = m_scr[...] + jnp.log(l_scr[...]) - tgt_scr[...]


def lm_head_with_loss(x2d, lnf_g, lnf_b, w, b, targets2d):
    N, D = x2d.shape
    V = w.shape[1]
    TM = _pick_tile(N, (512, 256, 128, 64, 32, 16, 8))
    TN = _pick_tile(V, (512, 256, 128))                  # lane-dense vocab tiles
    logits, nll = pl.pallas_call(
        _head_loss_kernel,
        out_shape=(jax.ShapeDtypeStruct((N, V), jnp.bfloat16),
                   jax.ShapeDtypeStruct((N, 1), jnp.float32)),
        grid_spec=pltpu.PrefetchScalarGridSpec(
            num_scalar_prefetch=0,
            grid=(N // TM, V // TN),
            in_specs=[
                pl.BlockSpec((TM, D), lambda i, j: (i, 0)),          # x rows
                _const_spec((1, D)), _const_spec((1, D)),            # ln_f gamma / beta
                pl.BlockSpec((D, TN), lambda i, j: (0, j)),          # head_w vocab tile (bf16)
                pl.BlockSpec((1, TN), lambda i, j: (0, j)),          # head_b vocab tile
                pl.BlockSpec((TM, 1), lambda i, j: (i, 0)),          # targets
            ],
            out_specs=[
                pl.BlockSpec((TM, TN), lambda i, j: (i, j)),         # logits (bf16)
                pl.BlockSpec((TM, 1), lambda i, j: (i, 0)),          # per-row NLL
            ],
            scratch_shapes=[
                pltpu.VMEM((TM, D), jnp.bfloat16),                   # LN(x) cache
                pltpu.VMEM((TM, 1), jnp.float32),                    # running max
                pltpu.VMEM((TM, 1), jnp.float32),                    # running sum-exp
                pltpu.VMEM((TM, 1), jnp.float32),                    # target logit
            ],
        ),
        compiler_params=_mosaic_params(("parallel", "arbitrary")),
    )(x2d, lnf_g, lnf_b, w, b, targets2d)
    return logits, nll


# ---------------------------------------------------------------------------
# Parameter init + full forward (embedding lookup / reshapes are plain-JAX glue)
# ---------------------------------------------------------------------------
def init_params(key, V, D, C, num_heads, num_layers):
    Dff = 4 * D
    hs = D // num_heads

    def normal(k, shape, scale=0.02, dtype=jnp.float32):
        return (scale * jax.random.normal(k, shape)).astype(dtype)

    keys = jax.random.split(key, 4 + num_layers)
    params = {
        "tok_emb": normal(keys[0], (V, D), 1.0, jnp.bfloat16),
        "pos_emb": normal(keys[1], (C, D), 1.0, jnp.bfloat16),
        "lnf_g": jnp.ones((1, D), jnp.float32),
        "lnf_b": jnp.zeros((1, D), jnp.float32),
        "head_w": normal(keys[2], (D, V), dtype=jnp.bfloat16),
        "head_b": jnp.zeros((1, V), jnp.float32),
        "blocks": [],
    }
    for li in range(num_layers):
        bk = jax.random.split(keys[4 + li], 4)
        params["blocks"].append({
            "ln1_g": jnp.ones((1, D), jnp.float32),
            "ln1_b": jnp.zeros((1, D), jnp.float32),
            "wqkv": normal(bk[0], (D, 3 * D), dtype=jnp.bfloat16),   # [Q | K | V], heads contiguous
            "wo": normal(bk[1], (num_heads, hs, D), dtype=jnp.bfloat16),
            "bo": jnp.zeros((1, D), jnp.float32),
            "ln2_g": jnp.ones((1, D), jnp.float32),
            "ln2_b": jnp.zeros((1, D), jnp.float32),
            "w1": normal(bk[2], (D, Dff), dtype=jnp.bfloat16),
            "b1": jnp.zeros((1, Dff), jnp.float32),
            "w2": normal(bk[3], (Dff, D), dtype=jnp.bfloat16),
            "b2": jnp.zeros((1, D), jnp.float32),
        })
    return params


def transformer_forward(params, idx, num_heads, targets=None):
    B, T = idx.shape
    D = params["tok_emb"].shape[1]
    V = params["head_w"].shape[1]

    tok_emb = jnp.take(params["tok_emb"], idx, axis=0)               # (B, T, D) bf16 gather
    pos_emb = params["pos_emb"][:T]                                  # (T, D) bf16
    x = (tok_emb + pos_emb[None, :, :]).astype(jnp.bfloat16)         # bf16 residual stream

    for bp in params["blocks"]:
        x = attention_layer(x, bp, num_heads)                        # LN1 + MHA + residual
        x = mlp_layer(x.reshape(B * T, D), bp).reshape(B, T, D)      # LN2 + MLP + residual

    x2d = x.reshape(B * T, D)
    if targets is None:
        tgt2d = jnp.zeros((B * T, 1), jnp.int32)                     # dummy; nll discarded
    else:
        tgt2d = targets.reshape(B * T, 1).astype(jnp.int32)

    logits2d, nll = lm_head_with_loss(x2d, params["lnf_g"], params["lnf_b"],
                                      params["head_w"], params["head_b"], tgt2d)
    logits = logits2d.reshape(B, T, V)
    if targets is None:
        return logits, None
    loss = jnp.mean(nll)     # mean over B*T rows == F.cross_entropy(reduction='mean')
    return logits, loss


if __name__ == "__main__":
    # Small but lane-dense config (D, V multiples of 128 -> unmasked vst output blocks).
    vocab_size = 1024
    embedding_dim = 128
    context_length = 16
    num_heads = 4            # head_size = 32
    num_layers = 2
    B, T = 2, context_length

    key = jax.random.PRNGKey(0)
    kp, ki, kt = jax.random.split(key, 3)
    params = init_params(kp, vocab_size, embedding_dim, context_length,
                         num_heads, num_layers)
    idx = jax.random.randint(ki, (B, T), 0, vocab_size, dtype=jnp.int32)
    targets = jax.random.randint(kt, (B, T), 0, vocab_size, dtype=jnp.int32)

    logits, loss = transformer_forward(params, idx, num_heads, targets=targets)
    logits = jax.block_until_ready(logits)
    loss = jax.block_until_ready(loss)

    assert logits.shape == (B, T, vocab_size)
    assert jnp.isfinite(loss)
    print("KERNEL_OK")
</pallas_src>

<mosaic_0001>
module attributes {stable_mosaic.version = 11 : i64} {
  func.func @_attn_kernel(%arg0: i32, %arg1: i32, %arg2: memref<1x16x128xbf16, #tpu.memory_space<vmem>>, %arg3: memref<1x16x128xbf16, #tpu.memory_space<vmem>>, %arg4: memref<1x128xf32, #tpu.memory_space<vmem>>, %arg5: memref<1x128xf32, #tpu.memory_space<vmem>>, %arg6: memref<128x384xbf16, #tpu.memory_space<vmem>>, %arg7: memref<4x32x128xbf16, #tpu.memory_space<vmem>>, %arg8: memref<1x128xf32, #tpu.memory_space<vmem>>, %arg9: memref<1x16x128xbf16, #tpu.memory_space<vmem>>, %arg10: memref<4x16x32xbf16, #tpu.memory_space<vmem>>, %arg11: memref<4x16x32xbf16, #tpu.memory_space<vmem>>, %arg12: memref<4x16x32xbf16, #tpu.memory_space<vmem>>) attributes {dimension_semantics = [#tpu.dimension_semantics<parallel>, #tpu.dimension_semantics<arbitrary>], iteration_bounds = array<i64: 2, 1>, scalar_prefetch = 0 : i64, scratch_operands = 3 : i64, tpu.core_type = #tpu.core_type<tc>, window_params = [{transform_indices = @transform_0, window_bounds = array<i64: 1, 16, 128>}, {transform_indices = @transform_1, window_bounds = array<i64: 1, 16, 128>}, {pipeline_mode = #tpu.pipeline_mode<synchronous>, transform_indices = @transform_2, window_bounds = array<i64: 1, 128>}, {pipeline_mode = #tpu.pipeline_mode<synchronous>, transform_indices = @transform_3, window_bounds = array<i64: 1, 128>}, {pipeline_mode = #tpu.pipeline_mode<synchronous>, transform_indices = @transform_4, window_bounds = array<i64: 128, 384>}, {pipeline_mode = #tpu.pipeline_mode<synchronous>, transform_indices = @transform_5, window_bounds = array<i64: 4, 32, 128>}, {pipeline_mode = #tpu.pipeline_mode<synchronous>, transform_indices = @transform_6, window_bounds = array<i64: 1, 128>}, {transform_indices = @transform_7, window_bounds = array<i64: 1, 16, 128>}]} {
    %c0_i32 = arith.constant 0 : i32
    %0 = arith.cmpi eq, %arg1, %c0_i32 : i32
    %1 = arith.extui %0 : i1 to i32
    %c0_i32_0 = arith.constant 0 : i32
    %2 = arith.cmpi ne, %1, %c0_i32_0 : i32
    scf.if %2 {
      %c0_60 = arith.constant 0 : index
      %c0_61 = arith.constant 0 : index
      %c0_62 = arith.constant 0 : index
      %107 = vector.load %arg3[%c0_60, %c0_61, %c0_62] : memref<1x16x128xbf16, #tpu.memory_space<vmem>>, vector<1x16x128xbf16>
      %108 = vector.shape_cast %107 : vector<1x16x128xbf16> to vector<16x128xbf16>
      %109 = arith.extf %108 : vector<16x128xbf16> to vector<16x128xf32>
      %c0_63 = arith.constant 0 : index
      %c0_64 = arith.constant 0 : index
      %110 = vector.load %arg4[%c0_63, %c0_64] : memref<1x128xf32, #tpu.memory_space<vmem>>, vector<1x128xf32>
      %c0_65 = arith.constant 0 : index
      %c0_66 = arith.constant 0 : index
      %111 = vector.load %arg5[%c0_65, %c0_66] : memref<1x128xf32, #tpu.memory_space<vmem>>, vector<1x128xf32>
      %cst_67 = arith.constant dense<0.000000e+00> : vector<16xf32>
      %112 = vector.multi_reduction <add>, %109, %cst_67 [1] : vector<16x128xf32> to vector<16xf32>
      %113 = vector.shape_cast %112 : vector<16xf32> to vector<16x1xf32>
      %cst_68 = arith.constant 1.280000e+02 : f32
      %114 = vector.broadcast %cst_68 : f32 to vector<16x1xf32>
      %115 = arith.divf %113, %114 : vector<16x1xf32>
      %116 = vector.broadcast %115 : vector<16x1xf32> to vector<16x128xf32>
      %117 = arith.subf %109, %116 : vector<16x128xf32>
      %118 = arith.mulf %117, %117 : vector<16x128xf32>
      %cst_69 = arith.constant dense<0.000000e+00> : vector<16xf32>
      %119 = vector.multi_reduction <add>, %118, %cst_69 [1] : vector<16x128xf32> to vector<16xf32>
      %120 = vector.shape_cast %119 : vector<16xf32> to vector<16x1xf32>
      %cst_70 = arith.constant 1.280000e+02 : f32
      %121 = vector.broadcast %cst_70 : f32 to vector<16x1xf32>
      %122 = arith.divf %120, %121 : vector<16x1xf32>
      %cst_71 = arith.constant 9.99999974E-6 : f32
      %123 = vector.broadcast %cst_71 : f32 to vector<16x1xf32>
      %124 = arith.addf %122, %123 : vector<16x1xf32>
      %125 = math.rsqrt %124 : vector<16x1xf32>
      %126 = vector.broadcast %125 : vector<16x1xf32> to vector<16x128xf32>
      %127 = arith.mulf %117, %126 : vector<16x128xf32>
      %128 = vector.broadcast %110 : vector<1x128xf32> to vector<16x128xf32>
      %129 = arith.mulf %127, %128 : vector<16x128xf32>
      %130 = vector.broadcast %111 : vector<1x128xf32> to vector<16x128xf32>
      %131 = arith.addf %129, %130 : vector<16x128xf32>
      %132 = arith.truncf %131 : vector<16x128xf32> to vector<16x128xbf16>
      %c0_72 = arith.constant 0 : index
      %c128 = arith.constant 128 : index
      %133 = vector.load %arg6[%c0_72, %c128] : memref<128x384xbf16, #tpu.memory_space<vmem>>, vector<128x256xbf16>
      %cst_73 = arith.constant dense<0.000000e+00> : vector<16x256xf32>
      %134 = tpu.matmul %132, %133, %cst_73 {dimension_numbers = #tpu.dot_dimension_numbers<[1], [0], [0], [1], [0, 0, 1, 1], [], []>} : vector<16x128xbf16>, vector<128x256xbf16>, vector<16x256xf32> -> vector<16x256xf32>
      %135 = arith.truncf %134 : vector<16x256xf32> to vector<16x256xbf16>
      %136 = vector.extract_strided_slice %135 {offsets = [0, 0], sizes = [16, 32], strides = [1, 1]} : vector<16x256xbf16> to vector<16x32xbf16>
      %c0_74 = arith.constant 0 : index
      %c0_75 = arith.constant 0 : index
      %c0_76 = arith.constant 0 : index
      %137 = vector.load %arg11[%c0_74, %c0_75, %c0_76] : memref<4x16x32xbf16, #tpu.memory_space<vmem>>, vector<1x16x32xbf16>
      %138 = vector.shape_cast %137 : vector<1x16x32xbf16> to vector<16x32xbf16>
      %139 = vector.shape_cast %136 : vector<16x32xbf16> to vector<1x16x32xbf16>
      tpu.vector_store %arg11[%c0_74, %c0_75, %c0_76], %139 {strides = array<i32>} : memref<4x16x32xbf16, #tpu.memory_space<vmem>>, vector<1x16x32xbf16>,
      %140 = vector.extract_strided_slice %135 {offsets = [0, 128], sizes = [16, 32], strides = [1, 1]} : vector<16x256xbf16> to vector<16x32xbf16>
      %c0_77 = arith.constant 0 : index
      %c0_78 = arith.constant 0 : index
      %c0_79 = arith.constant 0 : index
      %141 = vector.load %arg12[%c0_77, %c0_78, %c0_79] : memref<4x16x32xbf16, #tpu.memory_space<vmem>>, vector<1x16x32xbf16>
      %142 = vector.shape_cast %141 : vector<1x16x32xbf16> to vector<16x32xbf16>
      %143 = vector.shape_cast %140 : vector<16x32xbf16> to vector<1x16x32xbf16>
      tpu.vector_store %arg12[%c0_77, %c0_78, %c0_79], %143 {strides = array<i32>} : memref<4x16x32xbf16, #tpu.memory_space<vmem>>, vector<1x16x32xbf16>,
      %144 = vector.extract_strided_slice %135 {offsets = [0, 32], sizes = [16, 32], strides = [1, 1]} : vector<16x256xbf16> to vector<16x32xbf16>
      %c1_80 = arith.constant 1 : index
      %c0_81 = arith.constant 0 : index
      %c0_82 = arith.constant 0 : index
      %145 = vector.load %arg11[%c1_80, %c0_81, %c0_82] : memref<4x16x32xbf16, #tpu.memory_space<vmem>>, vector<1x16x32xbf16>
      %146 = vector.shape_cast %145 : vector<1x16x32xbf16> to vector<16x32xbf16>
      %147 = vector.shape_cast %144 : vector<16x32xbf16> to vector<1x16x32xbf16>
      tpu.vector_store %arg11[%c1_80, %c0_81, %c0_82], %147 {strides = array<i32>} : memref<4x16x32xbf16, #tpu.memory_space<vmem>>, vector<1x16x32xbf16>,
      %148 = vector.extract_strided_slice %135 {offsets = [0, 160], sizes = [16, 32], strides = [1, 1]} : vector<16x256xbf16> to vector<16x32xbf16>
      %c1_83 = arith.constant 1 : index
      %c0_84 = arith.constant 0 : index
      %c0_85 = arith.constant 0 : index
      %149 = vector.load %arg12[%c1_83, %c0_84, %c0_85] : memref<4x16x32xbf16, #tpu.memory_space<vmem>>, vector<1x16x32xbf16>
      %150 = vector.shape_cast %149 : vector<1x16x32xbf16> to vector<16x32xbf16>
      %151 = vector.shape_cast %148 : vector<16x32xbf16> to vector<1x16x32xbf16>
      tpu.vector_store %arg12[%c1_83, %c0_84, %c0_85], %151 {strides = array<i32>} : memref<4x16x32xbf16, #tpu.memory_space<vmem>>, vector<1x16x32xbf16>,
      %152 = vector.extract_strided_slice %135 {offsets = [0, 64], sizes = [16, 32], strides = [1, 1]} : vector<16x256xbf16> to vector<16x32xbf16>
      %c2_86 = arith.constant 2 : index
      %c0_87 = arith.constant 0 : index
      %c0_88 = arith.constant 0 : index
      %153 = vector.load %arg11[%c2_86, %c0_87, %c0_88] : memref<4x16x32xbf16, #tpu.memory_space<vmem>>, vector<1x16x32xbf16>
      %154 = vector.shape_cast %153 : vector<1x16x32xbf16> to vector<16x32xbf16>
      %155 = vector.shape_cast %152 : vector<16x32xbf16> to vector<1x16x32xbf16>
      tpu.vector_store %arg11[%c2_86, %c0_87, %c0_88], %155 {strides = array<i32>} : memref<4x16x32xbf16, #tpu.memory_space<vmem>>, vector<1x16x32xbf16>,
      %156 = vector.extract_strided_slice %135 {offsets = [0, 192], sizes = [16, 32], strides = [1, 1]} : vector<16x256xbf16> to vector<16x32xbf16>
      %c2_89 = arith.constant 2 : index
      %c0_90 = arith.constant 0 : index
      %c0_91 = arith.constant 0 : index
      %157 = vector.load %arg12[%c2_89, %c0_90, %c0_91] : memref<4x16x32xbf16, #tpu.memory_space<vmem>>, vector<1x16x32xbf16>
      %158 = vector.shape_cast %157 : vector<1x16x32xbf16> to vector<16x32xbf16>
      %159 = vector.shape_cast %156 : vector<16x32xbf16> to vector<1x16x32xbf16>
      tpu.vector_store %arg12[%c2_89, %c0_90, %c0_91], %159 {strides = array<i32>} : memref<4x16x32xbf16, #tpu.memory_space<vmem>>, vector<1x16x32xbf16>,
      %160 = vector.extract_strided_slice %135 {offsets = [0, 96], sizes = [16, 32], strides = [1, 1]} : vector<16x256xbf16> to vector<16x32xbf16>
      %c3_92 = arith.constant 3 : index
      %c0_93 = arith.constant 0 : index
      %c0_94 = arith.constant 0 : index
      %161 = vector.load %arg11[%c3_92, %c0_93, %c0_94] : memref<4x16x32xbf16, #tpu.memory_space<vmem>>, vector<1x16x32xbf16>
      %162 = vector.shape_cast %161 : vector<1x16x32xbf16> to vector<16x32xbf16>
      %163 = vector.shape_cast %160 : vector<16x32xbf16> to vector<1x16x32xbf16>
      tpu.vector_store %arg11[%c3_92, %c0_93, %c0_94], %163 {strides = array<i32>} : memref<4x16x32xbf16, #tpu.memory_space<vmem>>, vector<1x16x32xbf16>,
      %164 = vector.extract_strided_slice %135 {offsets = [0, 224], sizes = [16, 32], strides = [1, 1]} : vector<16x256xbf16> to vector<16x32xbf16>
      %c3_95 = arith.constant 3 : index
      %c0_96 = arith.constant 0 : index
      %c0_97 = arith.constant 0 : index
      %165 = vector.load %arg12[%c3_95, %c0_96, %c0_97] : memref<4x16x32xbf16, #tpu.memory_space<vmem>>, vector<1x16x32xbf16>
      %166 = vector.shape_cast %165 : vector<1x16x32xbf16> to vector<16x32xbf16>
      %167 = vector.shape_cast %164 : vector<16x32xbf16> to vector<1x16x32xbf16>
      tpu.vector_store %arg12[%c3_95, %c0_96, %c0_97], %167 {strides = array<i32>} : memref<4x16x32xbf16, #tpu.memory_space<vmem>>, vector<1x16x32xbf16>,
    } else {
    }
    %c0 = arith.constant 0 : index
    %c0_1 = arith.constant 0 : index
    %c0_2 = arith.constant 0 : index
    %3 = vector.load %arg2[%c0, %c0_1, %c0_2] : memref<1x16x128xbf16, #tpu.memory_space<vmem>>, vector<1x16x128xbf16>
    %4 = vector.shape_cast %3 : vector<1x16x128xbf16> to vector<16x128xbf16>
    %5 = arith.extf %4 : vector<16x128xbf16> to vector<16x128xf32>
    %c0_3 = arith.constant 0 : index
    %c0_4 = arith.constant 0 : index
    %6 = vector.load %arg4[%c0_3, %c0_4] : memref<1x128xf32, #tpu.memory_space<vmem>>, vector<1x128xf32>
    %c0_5 = arith.constant 0 : index
    %c0_6 = arith.constant 0 : index
    %7 = vector.load %arg5[%c0_5, %c0_6] : memref<1x128xf32, #tpu.memory_space<vmem>>, vector<1x128xf32>
    %cst = arith.constant dense<0.000000e+00> : vector<16xf32>
    %8 = vector.multi_reduction <add>, %5, %cst [1] : vector<16x128xf32> to vector<16xf32>
    %9 = vector.shape_cast %8 : vector<16xf32> to vector<16x1xf32>
    %cst_7 = arith.constant 1.280000e+02 : f32
    %10 = vector.broadcast %cst_7 : f32 to vector<16x1xf32>
    %11 = arith.divf %9, %10 : vector<16x1xf32>
    %12 = vector.broadcast %11 : vector<16x1xf32> to vector<16x128xf32>
    %13 = arith.subf %5, %12 : vector<16x128xf32>
    %14 = arith.mulf %13, %13 : vector<16x128xf32>
    %cst_8 = arith.constant dense<0.000000e+00> : vector<16xf32>
    %15 = vector.multi_reduction <add>, %14, %cst_8 [1] : vector<16x128xf32> to vector<16xf32>
    %16 = vector.shape_cast %15 : vector<16xf32> to vector<16x1xf32>
    %cst_9 = arith.constant 1.280000e+02 : f32
    %17 = vector.broadcast %cst_9 : f32 to vector<16x1xf32>
    %18 = arith.divf %16, %17 : vector<16x1xf32>
    %cst_10 = arith.constant 9.99999974E-6 : f32
    %19 = vector.broadcast %cst_10 : f32 to vector<16x1xf32>
    %20 = arith.addf %18, %19 : vector<16x1xf32>
    %21 = math.rsqrt %20 : vector<16x1xf32>
    %22 = vector.broadcast %21 : vector<16x1xf32> to vector<16x128xf32>
    %23 = arith.mulf %13, %22 : vector<16x128xf32>
    %24 = vector.broadcast %6 : vector<1x128xf32> to vector<16x128xf32>
    %25 = arith.mulf %23, %24 : vector<16x128xf32>
    %26 = vector.broadcast %7 : vector<1x128xf32> to vector<16x128xf32>
    %27 = arith.addf %25, %26 : vector<16x128xf32>
    %28 = arith.truncf %27 : vector<16x128xf32> to vector<16x128xbf16>
    %c0_11 = arith.constant 0 : index
    %c0_12 = arith.constant 0 : index
    %29 = vector.load %arg6[%c0_11, %c0_12] : memref<128x384xbf16, #tpu.memory_space<vmem>>, vector<128x128xbf16>
    %cst_13 = arith.constant dense<0.000000e+00> : vector<16x128xf32>
    %30 = tpu.matmul %28, %29, %cst_13 {dimension_numbers = #tpu.dot_dimension_numbers<[1], [0], [0], [1], [0, 0, 1, 1], [], []>} : vector<16x128xbf16>, vector<128x128xbf16>, vector<16x128xf32> -> vector<16x128xf32>
    %31 = arith.truncf %30 : vector<16x128xf32> to vector<16x128xbf16>
    %32 = vector.extract_strided_slice %31 {offsets = [0, 0], sizes = [16, 32], strides = [1, 1]} : vector<16x128xbf16> to vector<16x32xbf16>
    %c0_14 = arith.constant 0 : index
    %c0_15 = arith.constant 0 : index
    %c0_16 = arith.constant 0 : index
    %33 = vector.load %arg10[%c0_14, %c0_15, %c0_16] : memref<4x16x32xbf16, #tpu.memory_space<vmem>>, vector<1x16x32xbf16>
    %34 = vector.shape_cast %33 : vector<1x16x32xbf16> to vector<16x32xbf16>
    %35 = vector.shape_cast %32 : vector<16x32xbf16> to vector<1x16x32xbf16>
    tpu.vector_store %arg10[%c0_14, %c0_15, %c0_16], %35 {strides = array<i32>} : memref<4x16x32xbf16, #tpu.memory_space<vmem>>, vector<1x16x32xbf16>,
    %36 = vector.extract_strided_slice %31 {offsets = [0, 32], sizes = [16, 32], strides = [1, 1]} : vector<16x128xbf16> to vector<16x32xbf16>
    %c1 = arith.constant 1 : index
    %c0_17 = arith.constant 0 : index
    %c0_18 = arith.constant 0 : index
    %37 = vector.load %arg10[%c1, %c0_17, %c0_18] : memref<4x16x32xbf16, #tpu.memory_space<vmem>>, vector<1x16x32xbf16>
    %38 = vector.shape_cast %37 : vector<1x16x32xbf16> to vector<16x32xbf16>
    %39 = vector.shape_cast %36 : vector<16x32xbf16> to vector<1x16x32xbf16>
    tpu.vector_store %arg10[%c1, %c0_17, %c0_18], %39 {strides = array<i32>} : memref<4x16x32xbf16, #tpu.memory_space<vmem>>, vector<1x16x32xbf16>,
    %40 = vector.extract_strided_slice %31 {offsets = [0, 64], sizes = [16, 32], strides = [1, 1]} : vector<16x128xbf16> to vector<16x32xbf16>
    %c2 = arith.constant 2 : index
    %c0_19 = arith.constant 0 : index
    %c0_20 = arith.constant 0 : index
    %41 = vector.load %arg10[%c2, %c0_19, %c0_20] : memref<4x16x32xbf16, #tpu.memory_space<vmem>>, vector<1x16x32xbf16>
    %42 = vector.shape_cast %41 : vector<1x16x32xbf16> to vector<16x32xbf16>
    %43 = vector.shape_cast %40 : vector<16x32xbf16> to vector<1x16x32xbf16>
    tpu.vector_store %arg10[%c2, %c0_19, %c0_20], %43 {strides = array<i32>} : memref<4x16x32xbf16, #tpu.memory_space<vmem>>, vector<1x16x32xbf16>,
    %44 = vector.extract_strided_slice %31 {offsets = [0, 96], sizes = [16, 32], strides = [1, 1]} : vector<16x128xbf16> to vector<16x32xbf16>
    %c3 = arith.constant 3 : index
    %c0_21 = arith.constant 0 : index
    %c0_22 = arith.constant 0 : index
    %45 = vector.load %arg10[%c3, %c0_21, %c0_22] : memref<4x16x32xbf16, #tpu.memory_space<vmem>>, vector<1x16x32xbf16>
    %46 = vector.shape_cast %45 : vector<1x16x32xbf16> to vector<16x32xbf16>
    %47 = vector.shape_cast %44 : vector<16x32xbf16> to vector<1x16x32xbf16>
    tpu.vector_store %arg10[%c3, %c0_21, %c0_22], %47 {strides = array<i32>} : memref<4x16x32xbf16, #tpu.memory_space<vmem>>, vector<1x16x32xbf16>,
    %c0_23 = arith.constant 0 : index
    %c0_24 = arith.constant 0 : index
    %c0_25 = arith.constant 0 : index
    %48 = vector.load %arg10[%c0_23, %c0_24, %c0_25] : memref<4x16x32xbf16, #tpu.memory_space<vmem>>, vector<4x16x32xbf16>
    %c0_26 = arith.constant 0 : index
    %c0_27 = arith.constant 0 : index
    %c0_28 = arith.constant 0 : index
    %49 = vector.load %arg11[%c0_26, %c0_27, %c0_28] : memref<4x16x32xbf16, #tpu.memory_space<vmem>>, vector<4x16x32xbf16>
    %c0_29 = arith.constant 0 : index
    %c0_30 = arith.constant 0 : index
    %c0_31 = arith.constant 0 : index
    %50 = vector.load %arg12[%c0_29, %c0_30, %c0_31] : memref<4x16x32xbf16, #tpu.memory_space<vmem>>, vector<4x16x32xbf16>
    "tpu.trace_start"() <{level = 10 : i32, message = "hqd,hkd->hqk"}> : () -> ()
    %cst_32 = arith.constant dense<0.000000e+00> : vector<4x16x16xf32>
    %51 = tpu.matmul %48, %49, %cst_32 {dimension_numbers = #tpu.dot_dimension_numbers<[2], [2], [1], [1], [0, 0, 0, 1, 1, 1], [0], [0]>} : vector<4x16x32xbf16>, vector<4x16x32xbf16>, vector<4x16x16xf32> -> vector<4x16x16xf32>
    "tpu.trace_stop"() : () -> ()
    %cst_33 = arith.constant 0.176776692 : f32
    %52 = vector.broadcast %cst_33 : f32 to vector<4x16x16xf32>
    %53 = arith.mulf %51, %52 : vector<4x16x16xf32>
    %54 = tpu.iota {dimensions = array<i32: 1>} : vector<4x16x16xi32>
    %c16_i32 = arith.constant 16 : i32
    %55 = arith.muli %arg1, %c16_i32 : i32
    %56 = vector.broadcast %55 : i32 to vector<4x16x16xi32>
    %57 = arith.addi %54, %56 : vector<4x16x16xi32>
    %58 = tpu.iota {dimensions = array<i32: 2>} : vector<4x16x16xi32>
    %59 = arith.cmpi sge, %57, %58 : vector<4x16x16xi32>
    %cst_34 = arith.constant -1.000000e+30 : f32
    %60 = vector.broadcast %cst_34 : f32 to vector<4x16x16xf32>
    %61 = arith.select %59, %53, %60 : vector<4x16x16xi1>, vector<4x16x16xf32>
    %cst_35 = arith.constant dense<0xFF800000> : vector<4x16xf32>
    %62 = vector.multi_reduction <maximumf>, %61, %cst_35 [2] : vector<4x16x16xf32> to vector<4x16xf32>
    %63 = vector.shape_cast %62 : vector<4x16xf32> to vector<4x16x1xf32>
    %64 = vector.broadcast %63 : vector<4x16x1xf32> to vector<4x16x16xf32>
    %65 = arith.subf %61, %64 : vector<4x16x16xf32>
    %66 = math.exp %65 : vector<4x16x16xf32>
    %cst_36 = arith.constant dense<0.000000e+00> : vector<4x16xf32>
    %67 = vector.multi_reduction <add>, %66, %cst_36 [2] : vector<4x16x16xf32> to vector<4x16xf32>
    %68 = vector.shape_cast %67 : vector<4x16xf32> to vector<4x16x1xf32>
    %69 = vector.broadcast %68 : vector<4x16x1xf32> to vector<4x16x16xf32>
    %70 = arith.divf %66, %69 : vector<4x16x16xf32>
    %71 = arith.truncf %70 : vector<4x16x16xf32> to vector<4x16x16xbf16>
    "tpu.trace_start"() <{level = 10 : i32, message = "hqk,hkd->hqd"}> : () -> ()
    %cst_37 = arith.constant dense<0.000000e+00> : vector<4x16x32xf32>
    %72 = tpu.matmul %71, %50, %cst_37 {dimension_numbers = #tpu.dot_dimension_numbers<[2], [1], [1], [2], [0, 0, 0, 1, 1, 2], [0], [0]>} : vector<4x16x16xbf16>, vector<4x16x32xbf16>, vector<4x16x32xf32> -> vector<4x16x32xf32>
    "tpu.trace_stop"() : () -> ()
    %73 = arith.truncf %72 : vector<4x16x32xf32> to vector<4x16x32xbf16>
    %cst_38 = arith.constant 0.000000e+00 : f32
    %74 = vector.broadcast %cst_38 : f32 to vector<16x128xf32>
    %75 = vector.extract_strided_slice %73 {offsets = [0, 0, 0], sizes = [1, 16, 32], strides = [1, 1, 1]} : vector<4x16x32xbf16> to vector<1x16x32xbf16>
    %76 = vector.shape_cast %75 : vector<1x16x32xbf16> to vector<16x32xbf16>
    %c0_39 = arith.constant 0 : index
    %c0_40 = arith.constant 0 : index
    %c0_41 = arith.constant 0 : index
    %77 = vector.load %arg7[%c0_39, %c0_40, %c0_41] : memref<4x32x128xbf16, #tpu.memory_space<vmem>>, vector<1x32x128xbf16>
    %78 = vector.shape_cast %77 : vector<1x32x128xbf16> to vector<32x128xbf16>
    %cst_42 = arith.constant dense<0.000000e+00> : vector<16x128xf32>
    %79 = tpu.matmul %76, %78, %cst_42 {dimension_numbers = #tpu.dot_dimension_numbers<[1], [0], [0], [1], [0, 0, 1, 1], [], []>} : vector<16x32xbf16>, vector<32x128xbf16>, vector<16x128xf32> -> vector<16x128xf32>
    %80 = arith.addf %74, %79 : vector<16x128xf32>
    %81 = vector.extract_strided_slice %73 {offsets = [1, 0, 0], sizes = [1, 16, 32], strides = [1, 1, 1]} : vector<4x16x32xbf16> to vector<1x16x32xbf16>
    %82 = vector.shape_cast %81 : vector<1x16x32xbf16> to vector<16x32xbf16>
    %c1_43 = arith.constant 1 : index
    %c0_44 = arith.constant 0 : index
    %c0_45 = arith.constant 0 : index
    %83 = vector.load %arg7[%c1_43, %c0_44, %c0_45] : memref<4x32x128xbf16, #tpu.memory_space<vmem>>, vector<1x32x128xbf16>
    %84 = vector.shape_cast %83 : vector<1x32x128xbf16> to vector<32x128xbf16>
    %cst_46 = arith.constant dense<0.000000e+00> : vector<16x128xf32>
    %85 = tpu.matmul %82, %84, %cst_46 {dimension_numbers = #tpu.dot_dimension_numbers<[1], [0], [0], [1], [0, 0, 1, 1], [], []>} : vector<16x32xbf16>, vector<32x128xbf16>, vector<16x128xf32> -> vector<16x128xf32>
    %86 = arith.addf %80, %85 : vector<16x128xf32>
    %87 = vector.extract_strided_slice %73 {offsets = [2, 0, 0], sizes = [1, 16, 32], strides = [1, 1, 1]} : vector<4x16x32xbf16> to vector<1x16x32xbf16>
    %88 = vector.shape_cast %87 : vector<1x16x32xbf16> to vector<16x32xbf16>
    %c2_47 = arith.constant 2 : index
    %c0_48 = arith.constant 0 : index
    %c0_49 = arith.constant 0 : index
    %89 = vector.load %arg7[%c2_47, %c0_48, %c0_49] : memref<4x32x128xbf16, #tpu.memory_space<vmem>>, vector<1x32x128xbf16>
    %90 = vector.shape_cast %89 : vector<1x32x128xbf16> to vector<32x128xbf16>
    %cst_50 = arith.constant dense<0.000000e+00> : vector<16x128xf32>
    %91 = tpu.matmul %88, %90, %cst_50 {dimension_numbers = #tpu.dot_dimension_numbers<[1], [0], [0], [1], [0, 0, 1, 1], [], []>} : vector<16x32xbf16>, vector<32x128xbf16>, vector<16x128xf32> -> vector<16x128xf32>
    %92 = arith.addf %86, %91 : vector<16x128xf32>
    %93 = vector.extract_strided_slice %73 {offsets = [3, 0, 0], sizes = [1, 16, 32], strides = [1, 1, 1]} : vector<4x16x32xbf16> to vector<1x16x32xbf16>
    %94 = vector.shape_cast %93 : vector<1x16x32xbf16> to vector<16x32xbf16>
    %c3_51 = arith.constant 3 : index
    %c0_52 = arith.constant 0 : index
    %c0_53 = arith.constant 0 : index
    %95 = vector.load %arg7[%c3_51, %c0_52, %c0_53] : memref<4x32x128xbf16, #tpu.memory_space<vmem>>, vector<1x32x128xbf16>
    %96 = vector.shape_cast %95 : vector<1x32x128xbf16> to vector<32x128xbf16>
    %cst_54 = arith.constant dense<0.000000e+00> : vector<16x128xf32>
    %97 = tpu.matmul %94, %96, %cst_54 {dimension_numbers = #tpu.dot_dimension_numbers<[1], [0], [0], [1], [0, 0, 1, 1], [], []>} : vector<16x32xbf16>, vector<32x128xbf16>, vector<16x128xf32> -> vector<16x128xf32>
    %98 = arith.addf %92, %97 : vector<16x128xf32>
    %c0_55 = arith.constant 0 : index
    %c0_56 = arith.constant 0 : index
    %99 = vector.load %arg8[%c0_55, %c0_56] : memref<1x128xf32, #tpu.memory_space<vmem>>, vector<1x128xf32>
    %100 = vector.broadcast %99 : vector<1x128xf32> to vector<16x128xf32>
    %101 = arith.addf %98, %100 : vector<16x128xf32>
    %102 = arith.addf %5, %101 : vector<16x128xf32>
    %103 = arith.truncf %102 : vector<16x128xf32> to vector<16x128xbf16>
    %c0_57 = arith.constant 0 : index
    %c0_58 = arith.constant 0 : index
    %c0_59 = arith.constant 0 : index
    %104 = vector.load %arg9[%c0_57, %c0_58, %c0_59] : memref<1x16x128xbf16, #tpu.memory_space<vmem>>, vector<1x16x128xbf16>
    %105 = vector.shape_cast %104 : vector<1x16x128xbf16> to vector<16x128xbf16>
    %106 = vector.shape_cast %103 : vector<16x128xbf16> to vector<1x16x128xbf16>
    tpu.vector_store %arg9[%c0_57, %c0_58, %c0_59], %106 {strides = array<i32>} : memref<1x16x128xbf16, #tpu.memory_space<vmem>>, vector<1x16x128xbf16>,
    return
  }
  func.func @transform_0(%arg0: i32, %arg1: i32) -> (i32, i32, i32) {
    %c0_i32 = arith.constant 0 : i32
    %c0_i32_0 = arith.constant 0 : i32
    return %arg0, %arg1, %c0_i32 : i32, i32, i32
  }
  func.func @transform_1(%arg0: i32, %arg1: i32) -> (i32, i32, i32) {
    %c0_i32 = arith.constant 0 : i32
    %c0_i32_0 = arith.constant 0 : i32
    %c0_i32_1 = arith.constant 0 : i32
    return %arg0, %c0_i32, %c0_i32_0 : i32, i32, i32
  }
  func.func @transform_2(%arg0: i32, %arg1: i32) -> (i32, i32) {
    %c0_i32 = arith.constant 0 : i32
    %c0_i32_0 = arith.constant 0 : i32
    %c0_i32_1 = arith.constant 0 : i32
    return %c0_i32, %c0_i32_0 : i32, i32
  }
  func.func @transform_3(%arg0: i32, %arg1: i32) -> (i32, i32) {
    %c0_i32 = arith.constant 0 : i32
    %c0_i32_0 = arith.constant 0 : i32
    %c0_i32_1 = arith.constant 0 : i32
    return %c0_i32, %c0_i32_0 : i32, i32
  }
  func.func @transform_4(%arg0: i32, %arg1: i32) -> (i32, i32) {
    %c0_i32 = arith.constant 0 : i32
    %c0_i32_0 = arith.constant 0 : i32
    %c0_i32_1 = arith.constant 0 : i32
    return %c0_i32, %c0_i32_0 : i32, i32
  }
  func.func @transform_5(%arg0: i32, %arg1: i32) -> (i32, i32, i32) {
    %c0_i32 = arith.constant 0 : i32
    %c0_i32_0 = arith.constant 0 : i32
    %c0_i32_1 = arith.constant 0 : i32
    %c0_i32_2 = arith.constant 0 : i32
    return %c0_i32, %c0_i32_0, %c0_i32_1 : i32, i32, i32
  }
  func.func @transform_6(%arg0: i32, %arg1: i32) -> (i32, i32) {
    %c0_i32 = arith.constant 0 : i32
    %c0_i32_0 = arith.constant 0 : i32
    %c0_i32_1 = arith.constant 0 : i32
    return %c0_i32, %c0_i32_0 : i32, i32
  }
  func.func @transform_7(%arg0: i32, %arg1: i32) -> (i32, i32, i32) {
    %c0_i32 = arith.constant 0 : i32
    %c0_i32_0 = arith.constant 0 : i32
    return %arg0, %arg1, %c0_i32 : i32, i32, i32
  }
}

</mosaic_0001>

<bundles_post_ra>
// kernel: tpu_custom_call.1
= control target key start
LH: loop header
LB: loop body
LE: loop exit
PB: predicated region body
PF: predicated region fallthrough
CT: control target
= control target key end

     0   :  { %s3093_s0 = inlined_call_operand.hbm [shape: bf16[2,16,128], index: 0, kind: input, shape index: {}]   ;;  %s3094_s1 = inlined_call_operand.hbm [shape: bf16[2,16,128], index: 1, kind: input, shape index: {}]   ;;  %s3095_s2 = inlined_call_operand.hbm [shape: f32[1,128], index: 2, kind: input, shape index: {}]   ;;  %s3096_s3 = inlined_call_operand.hbm [shape: f32[1,128], index: 3, kind: input, shape index: {}]   ;;  %s3097_s4 = inlined_call_operand.hbm [shape: bf16[128,384], index: 4, kind: input, shape index: {}]   ;;  %s3098_s5 = inlined_call_operand.hbm [shape: bf16[4,32,128], index: 5, kind: input, shape index: {}]   ;;  %s3099_s6 = inlined_call_operand.hbm [shape: f32[1,128], index: 6, kind: input, shape index: {}]   ;;  %s3100_s7 = inlined_call_operand.hbm [shape: bf16[2,16,128], index: 7, kind: output, shape index: {}]  }
   0x1   :  { %3108 = sst [smem:[#allocation24_spill]] %s3093_s0 }
   0x2   :  { %3109 = sst [smem:[#allocation25_spill]] %s3095_s2 }
   0x3   :  { %3110 = sst [smem:[#allocation26_spill]] %s3096_s3 }
   0x4   :  { %3111 = sst [smem:[#allocation27_spill]] %s3097_s4 }
   0x5   :  { %3112 = sst [smem:[#allocation28_spill]] %s3098_s5 }
   0x6   :  { %3113 = sst [smem:[#allocation29_spill]] %s3099_s6 }
   0x7   :  { %12 = vsyncpa [#allocation6], 0 }
   0x8   :  { %14 = vsyncpa [#allocation6 + $0x1], 0 }
   0x9   :  { %15 = vsyncpa [#allocation9], 0 }
   0xa   :  { %17 = vsyncpa [#allocation9 + $0x1], 0 }
   0xb   :  { %18 = vsyncpa [#allocation12], 0 }
   0xc   :  { %19 = vsyncpa [#allocation15], 0 }
   0xd   :  { %20 = vsyncpa [#allocation7], 0 }
   0xe   :  { %22 = vsyncpa [#allocation7 + $0x1], 0  ;;  %s2564_s24 = smov 0   ;;  %s2566_s25 = smov 0  }
   0xf   :  { %s2568_s26 = smov 0   ;;  %s2570_s27 = smov 0  }
  0x10   :  { %s2572_s28 = smov 0   ;;  %s2574_s29 = smov 0  }
  0x11 LB: > { %s2595_s30 = sadd.s32 4294967295, %s2503_s29   ;;  %p1763_p0 = scmp.ge.s32.totalorder %s2503_s29, 1  ;;  %s2503_s29 = sphi %s2574_s29, %s28_s29   ;;  %s2499_s28 = sphi %s2572_s28, %s3145_s28   ;;  %s2495_s27 = sphi %s2570_s27, %s3144_s27   ;;  %s2491_s26 = sphi %s2568_s26, %s3143_s26   ;;  %s2487_s25 = sphi %s2566_s25, %s3142_s25   ;;  %s2483_s24 = sphi %s2564_s24, %s3141_s24  }
  0x12   : > { %p3101_p1 = scmp.eq.s32.totalorder %s2595_s30, 0  ;;  %p232_p2 = scmp.lt.s32.totalorder %s2503_s29, 3 }
  0x13   : > { %s2505_s9 = smov [#allocation10]   ;;  %s2506_s11 = smov [#allocation11]  }
  0x14   : > { %p2600_p3 = pnand %p1763_p0, %p232_p2  ;;  %s245_s10 = sshll.u32 %s2505_s9, 4  ;;  %s246_s10 = int_to_ptr.vmem [resolvable:$true] %s245_s10 }
  0x15   : > { %s256_s12 = sshll.u32 %s2506_s11, 4  ;;  %s2507_s14 = smov [#allocation14]   ;;  %s2613_s12 = int_to_ptr.vmem [resolvable:$true] %s256_s12 }
  0x16   : > { %s3114_s8 = scalar_select %p2600_p3, 1, 0 }
  0x17   : > { %p2022_p5 = pneg %p2600_p3  ;;  %s279_s15 = sshll.u32 %s2507_s14, 4  ;;  %s2615_s15 = int_to_ptr.vmem [resolvable:$true] %s279_s15 }
  0x18   : > { %s3116_s2 = sld [smem:[#allocation25_spill]] }
  0x19   : > { %p2609_p6 = pnand %p2022_p5, %p3101_p1 }
  0x1b   : > { %p2625_p8 = pneg %p2609_p6 }
  0x1e   : > { %s2205_s18 = scalar_lea.hbm %s3116_s2, 16 }
  0x1f   : > { %p2206_p7 = scmp.ne.s32.totalorder %s3116_s2, %s2205_s18  ;;  %p2212_p11 = scmp.lt.u32.totalorder %s2205_s18, %s3116_s2 }
  0x21   : > { %p2208_p9 = pnand %p2625_p8, %p2206_p7 }
  0x23   : > { %p2209_p10 = pneg %p2208_p9 }
  0x25   : > { %p2214_p12 = pnand %p2212_p11, %p2209_p10 }
  0x27   : > { %2217 = shalt.err (!%p2214_p12)
}
  0x28   : > { %s2218_s9 = scalar_lea.vmem %s246_s10, 16  ;;  %s2225_s11 = scalar_lea.vmem %s246_s10, 32 }
  0x29   : > { %p2219_p13 = scmp.ne.s32.totalorder %s246_s10, %s2218_s9  ;;  %p2226_p5 = scmp.lt.s32.totalorder %s246_s10, %s246_s10 }
  0x2a   : > { %p2227_p4 = scmp.lt.s32.totalorder %s2225_s11, %s2218_s9 }
  0x2b   : > { %p2221_p0 = pnand %p2219_p13, %p2625_p8 }
  0x2c   : > { %p2228_p1 = por %p2227_p4, %p2226_p5 }
  0x2d   : > { %p2222_p2 = pneg %p2221_p0 }
  0x2f   : > { %p2229_p3 = pnand %p2228_p1, %p2222_p2 }
  0x31   : > { %2232 = shalt.err (!%p2229_p3)
}
  0x32   : > { %2025 = dma.hbm_to_vmem [thread:$0]  (!%p2609_p6), %s3116_s2, 16, %s246_s10, [#allocation9]  }
  0x33   : > { %s3118_s3 = sld [smem:[#allocation26_spill]] }
  0x39   : > { %s2233_s19 = scalar_lea.hbm %s3118_s3, 16 }
  0x3a   : > { %p2234_p7 = scmp.ne.s32.totalorder %s3118_s3, %s2233_s19  ;;  %p2240_p1 = scmp.lt.u32.totalorder %s2233_s19, %s3118_s3 }
  0x3c   : > { %p2236_p9 = pnand %p2234_p7, %p2625_p8 }
  0x3e   : > { %p2237_p4 = pneg %p2236_p9 }
  0x40   : > { %p2242_p3 = pnand %p2240_p1, %p2237_p4 }
  0x42   : > { %2245 = shalt.err (!%p2242_p3)
}
  0x43   : > { %s2246_s10 = scalar_lea.vmem %s2613_s12, 16  ;;  %s2253_s11 = scalar_lea.vmem %s2613_s12, 32 }
  0x44   : > { %p2247_p10 = scmp.ne.s32.totalorder %s2613_s12, %s2246_s10  ;;  %p2254_p13 = scmp.lt.s32.totalorder %s2613_s12, %s2613_s12 }
  0x45   : > { %p2255_p0 = scmp.lt.s32.totalorder %s2253_s11, %s2246_s10 }
  0x46   : > { %p2249_p11 = pnand %p2247_p10, %p2625_p8 }
  0x47   : > { %p2256_p2 = por %p2255_p0, %p2254_p13 }
  0x48   : > { %p2250_p12 = pneg %p2249_p11 }
  0x4a   : > { %p2257_p5 = pnand %p2256_p2, %p2250_p12 }
  0x4c   : > { %2260 = shalt.err (!%p2257_p5)
}
  0x4d   : > { %2028 = dma.hbm_to_vmem [thread:$0]  (!%p2609_p6), %s3118_s3, 16, %s2613_s12, [#allocation12]  }
  0x4e   : > { %s3119_s5 = sld [smem:[#allocation28_spill]] }
  0x54   : > { %s2261_s19 = scalar_lea.hbm %s3119_s5, 1024 }
  0x55   : > { %p2262_p7 = scmp.ne.s32.totalorder %s3119_s5, %s2261_s19  ;;  %p2268_p1 = scmp.lt.u32.totalorder %s2261_s19, %s3119_s5 }
  0x57   : > { %p2264_p9 = pnand %p2262_p7, %p2625_p8 }
  0x59   : > { %p2265_p4 = pneg %p2264_p9 }
  0x5b   : > { %p2270_p3 = pnand %p2268_p1, %p2265_p4 }
  0x5d   : > { %2273 = shalt.err (!%p2270_p3)
}
  0x5e   : > { %s2274_s12 = scalar_lea.vmem %s2615_s15, 1024  ;;  %p2282_p13 = scmp.lt.s32.totalorder %s2615_s15, %s2615_s15 }
  0x5f   : > { %p2275_p10 = scmp.ne.s32.totalorder %s2615_s15, %s2274_s12  ;;  %p2283_p0 = scmp.lt.s32.totalorder %s2274_s12, %s2274_s12 }
  0x61   : > { %p2277_p11 = pnand %p2275_p10, %p2625_p8  ;;  %p2284_p2 = por %p2283_p0, %p2282_p13 }
  0x63   : > { %p2278_p12 = pneg %p2277_p11 }
  0x65   : > { %p2285_p5 = pnand %p2284_p2, %p2278_p12 }
  0x67   : > { %2288 = shalt.err (!%p2285_p5)
}
  0x68   : > { %s3103_s10 = smov 64   ;;  %s3105_s11 = smov 4  }
  0x69   : > { %2034 = dma.hbm_to_vmem [thread:$0]  (!%p2609_p6), %s3119_s5, 1024, %s2615_s15, [#allocation15], %s3103_s10, %s3103_s10, %s3105_s11  }
  0x6a   : > { %s2510_s17 = smov [#allocation13]   ;;  %s3120_s4 = sld [smem:[#allocation27_spill]] }
  0x6b   : > { %s266_s18 = sshll.u32 %s2510_s17, 4  ;;  %s267_s18 = int_to_ptr.vmem [resolvable:$true] %s266_s18 }
  0x70   : > { %s2289_s22 = scalar_lea.hbm %s3120_s4, 3072 }
  0x71   : > { %p2290_p7 = scmp.ne.s32.totalorder %s3120_s4, %s2289_s22  ;;  %p2296_p1 = scmp.lt.u32.totalorder %s2289_s22, %s3120_s4 }
  0x73   : > { %p2292_p9 = pnand %p2290_p7, %p2625_p8 }
  0x75   : > { %p2293_p4 = pneg %p2292_p9 }
  0x77   : > { %p2298_p3 = pnand %p2296_p1, %p2293_p4 }
  0x79   : > { %2301 = shalt.err (!%p2298_p3)
}
  0x7a   : > { %s2302_s15 = scalar_lea.vmem %s267_s18, 3072  ;;  %p2310_p13 = scmp.lt.s32.totalorder %s267_s18, %s267_s18 }
  0x7b   : > { %p2303_p10 = scmp.ne.s32.totalorder %s267_s18, %s2302_s15  ;;  %p2311_p0 = scmp.lt.s32.totalorder %s2302_s15, %s2302_s15 }
  0x7d   : > { %p2305_p11 = pnand %p2303_p10, %p2625_p8  ;;  %p2312_p2 = por %p2311_p0, %p2310_p13 }
  0x7f   : > { %p2306_p12 = pneg %p2305_p11 }
  0x81   : > { %p2313_p5 = pnand %p2312_p2, %p2306_p12 }
  0x83   : > { %2316 = shalt.err (!%p2313_p5)
}
  0x84   : > { %s2511_s14 = smov 192   ;;  %s2512_s16 = smov 12  }
  0x85   : > { %2031 = dma.hbm_to_vmem [thread:$0]  (!%p2609_p6), %s3120_s4, 3072, %s267_s18, [#allocation12], %s2511_s14, %s2511_s14, %s2512_s16  }
  0x86   : > { %s2513_s19 = smov [#allocation16]   ;;  %s3121_s6 = sld [smem:[#allocation29_spill]] }
  0x87   : > { %s293_s20 = sshll.u32 %s2513_s19, 4  ;;  %s294_s20 = int_to_ptr.vmem [resolvable:$true] %s293_s20 }
  0x8c   : > { %s2317_s9 = scalar_lea.hbm %s3121_s6, 16 }
  0x8d   : > { %p2318_p7 = scmp.ne.s32.totalorder %s3121_s6, %s2317_s9  ;;  %p2324_p1 = scmp.lt.u32.totalorder %s2317_s9, %s3121_s6 }
  0x8f   : > { %p2320_p9 = pnand %p2318_p7, %p2625_p8 }
  0x91   : > { %p2321_p4 = pneg %p2320_p9 }
  0x93   : > { %p2326_p3 = pnand %p2324_p1, %p2321_p4 }
  0x95   : > { %2329 = shalt.err (!%p2326_p3)
}
  0x96   : > { %s2330_s18 = scalar_lea.vmem %s294_s20, 16  ;;  %s2337_s14 = scalar_lea.vmem %s294_s20, 32 }
  0x97   : > { %p2331_p10 = scmp.ne.s32.totalorder %s294_s20, %s2330_s18  ;;  %p2338_p13 = scmp.lt.s32.totalorder %s294_s20, %s294_s20 }
  0x98   : > { %p2339_p0 = scmp.lt.s32.totalorder %s2337_s14, %s2330_s18 }
  0x99   : > { %p2333_p11 = pnand %p2331_p10, %p2625_p8 }
  0x9a   : > { %p2340_p2 = por %p2339_p0, %p2338_p13 }
  0x9b   : > { %p2334_p12 = pneg %p2333_p11 }
  0x9d   : > { %p2341_p5 = pnand %p2340_p2, %p2334_p12 }
  0x9f   : > { %2344 = shalt.err (!%p2341_p5)
}
  0xa0   : > { %2037 = dma.hbm_to_vmem [thread:$0]  (!%p2609_p6), %s3121_s6, 16, %s294_s20, [#allocation15]  }
  0xa1   : > { %s1762_s21 = sadd.s32 4294967294, %s2503_s29   ;;  %s40_s10 = sadd.s32 1, %s2499_s28 }
  0xa2   : > { %s49_s13 = sadd.s32 1, %s2491_s26  ;;  %p42_p8 = scmp.ge.s32.totalorder %s40_s10, 2 }
  0xa3   : > { %p56_p7 = scmp.ne.s32.totalorder %s2491_s26, %s2487_s25  ;;  %p57_p9 = scmp.eq.s32.totalorder %s2503_s29, 0 }
  0xa4   : > { %p62_p4 = scmp.ne.s32.totalorder %s2487_s25, %s2483_s24  ;;  %s3147_s10 = smov (%p42_p8, %s40_s10), 0 }
  0xa5   : > { %p2737_p1 = por %p57_p9, %p56_p7  ;;  %p3123_p3 = scmp.eq.s32.totalorder %s2595_s30, 0 }
  0xa6   : > { %s44_s19 = ssub.s32 %s2499_s28, %s3147_s10  ;;  %p219_p10 = scmp.eq.s32.totalorder %s2595_s30, 1 }
  0xa7   : > { %p2743_p6 = por %p3123_p3, %p62_p4  ;;  %p47_p11 = scmp.eq.s32.totalorder %s44_s19, 0 }
  0xa8   : > { %p225_p12 = scmp.eq.s32.totalorder %s1762_s21, 1  ;;  %p2750_p13 = por %p219_p10, %p56_p7 }
  0xa9   : > { %p2054_p0 = scmp.lt.s32.totalorder %s2503_s29, 2  ;;  %s304_s9 = sand.u32 1, %s2491_s26  }
  0xaa   : > { %s3125_s20 = scalar_select %p2750_p13, 1, 0 }
  0xab   : > { %s2756_s22 = scalar_select %p47_p11, %s2491_s26, %s49_s13  }
  0xac   : > { %p2758_p2 = por %p225_p12, %p62_p4  ;;  %s1770_s12 = sshll.u32 %s304_s9, 3 }
  0xad   : > { %s1841_s15 = sshll.u32 %s2499_s28, 7  ;;  %s3127_s0 = sld [smem:[#allocation24_spill]] }
  0xae   : > { %s3126_s23 = scalar_select %p2758_p2, 1, 0 }
  0xaf   : > { %s308_s2 = scalar_lea.vmem [#allocation5], %s1770_s12  ;;  %p2773_p5 = pnand %p2054_p0, %p2737_p1 }
  0xb0   : > { %s317_s21 = sshll.u32 %s308_s2, 4  ;;  %s2780_s18 = scalar_lea.hbm %s3094_s1, %s1841_s15  ;;  %s2769_s21 = int_to_ptr.vmem [resolvable:$true] %s317_s21 }
  0xb1   : > { %s331_s14 = scalar_lea.vmem [#allocation8], %s1770_s12  ;;  %s2784_s5 = scalar_lea.sflag [#allocation6], %s304_s9 }
  0xb2   : > { %s2782_s4 = sshll.u32 %s331_s14, 4  ;;  %p2347_p7 = pneg %p2773_p5  ;;  %s2816_s4 = int_to_ptr.vmem [resolvable:$true] %s2782_s4 }
  0xb3   : > { %s2767_s16 = scalar_lea.hbm %s3127_s0, %s1841_s15  ;;  %s2350_s3 = scalar_lea.hbm %s3127_s0, 256 }
  0xb4   : > { %s2345_s2 = scalar_lea.hbm %s2767_s16, 128  ;;  %p2351_p1 = scmp.lt.u32.totalorder %s2767_s16, %s3127_s0 }
  0xb5   : > { %p2346_p8 = scmp.ne.s32.totalorder %s2767_s16, %s2345_s2  ;;  %p2352_p3 = scmp.lt.u32.totalorder %s2350_s3, %s2345_s2 }
  0xb6   : > { %p2354_p11 = scmp.lt.u32.totalorder %s2345_s2, %s2767_s16 }
  0xb7   : > { %p2348_p9 = pnand %p2347_p7, %p2346_p8  ;;  %p2353_p10 = por %p2352_p3, %p2351_p1 }
  0xb9   : > { %p2349_p4 = pneg %p2348_p9  ;;  %p2355_p12 = por %p2354_p11, %p2353_p10 }
  0xbb   : > { %p2356_p0 = pnand %p2355_p12, %p2349_p4 }
  0xbd   : > { %2359 = shalt.err (!%p2356_p0)
}
  0xbe   : > { %s2360_s9 = scalar_lea.vmem %s2769_s21, 128  ;;  %s2514_s6 = smov [#allocation5]  }
  0xbf   : > { %p2361_p8 = scmp.ne.s32.totalorder %s2769_s21, %s2360_s9  ;;  %s2365_s12 = sshll.u32 %s2514_s6, 4  ;;  %s2366_s12 = int_to_ptr.vmem [resolvable:$false] %s2365_s12 }
  0xc0   : > { %s2367_s14 = scalar_lea.vmem %s2366_s12, 256  ;;  %p2368_p13 = scmp.lt.s32.totalorder %s2769_s21, %s2366_s12 }
  0xc1   : > { %p2363_p9 = pnand %p2361_p8, %p2347_p7  ;;  %p2369_p1 = scmp.lt.s32.totalorder %s2367_s14, %s2360_s9 }
  0xc3   : > { %p2364_p2 = pneg %p2363_p9  ;;  %p2370_p3 = por %p2369_p1, %p2368_p13 }
  0xc5   : > { %p2371_p10 = pnand %p2370_p3, %p2364_p2 }
  0xc7   : > { %2374 = shalt.err (!%p2371_p10)
}
  0xc8   : > { %s3129_s2 = smov 4   ;;  %s3130_s11 = smov 64  }
  0xc9   : > { %2041 = dma.hbm_to_vmem [thread:$0]  (!%p2773_p5), %s2767_s16, 128, %s2769_s21, %s2784_s5, %s3130_s11, %s3130_s11, %s3129_s2  }
  0xca   : > { %s327_s3 = sand.u32 1, %s2503_s29   ;;  %s2375_s15 = scalar_lea.hbm %s2780_s18, 128 }
  0xcb   : > { %s2819_s19 = scalar_lea.sflag [#allocation9], %s327_s3  ;;  %p2376_p13 = scmp.ne.s32.totalorder %s2780_s18, %s2375_s15 }
  0xcc   : > { %s2380_s12 = scalar_lea.hbm %s3094_s1, 256  ;;  %p2381_p11 = scmp.lt.u32.totalorder %s2780_s18, %s3094_s1 }
  0xcd   : > { %p2378_p2 = pnand %p2376_p13, %p2347_p7  ;;  %p2382_p12 = scmp.lt.u32.totalorder %s2380_s12, %s2375_s15 }
  0xce   : > { %p2384_p8 = scmp.lt.u32.totalorder %s2375_s15, %s2780_s18 }
  0xcf   : > { %p2379_p4 = pneg %p2378_p2  ;;  %p2383_p0 = por %p2382_p12, %p2381_p11 }
  0xd1   : > { %p2385_p9 = por %p2384_p8, %p2383_p0 }
  0xd3   : > { %p2386_p1 = pnand %p2385_p9, %p2379_p4 }
  0xd5   : > { %2389 = shalt.err (!%p2386_p1)
}
  0xd6   : > { %s2390_s5 = scalar_lea.vmem %s2816_s4, 128  ;;  %s2515_s16 = smov [#allocation8]  }
  0xd7   : > { %p2391_p3 = scmp.ne.s32.totalorder %s2816_s4, %s2390_s5  ;;  %s2395_s21 = sshll.u32 %s2515_s16, 4  ;;  %s2396_s21 = int_to_ptr.vmem [resolvable:$false] %s2395_s21 }
  0xd8   : > { %s2397_s0 = scalar_lea.vmem %s2396_s21, 256  ;;  %p2398_p2 = scmp.lt.s32.totalorder %s2816_s4, %s2396_s21 }
  0xd9   : > { %p2393_p10 = pnand %p2391_p3, %p2347_p7  ;;  %p2399_p11 = scmp.lt.s32.totalorder %s2397_s0, %s2390_s5 }
  0xdb   : > { %p2394_p13 = pneg %p2393_p10  ;;  %p2400_p12 = por %p2399_p11, %p2398_p2 }
  0xdd   : > { %p2401_p0 = pnand %p2400_p12, %p2394_p13 }
  0xdf   : > { %2404 = shalt.err (!%p2401_p0)
}
  0xe0   : > { %2044 = dma.hbm_to_vmem [thread:$0]  (!%p2773_p5), %s2780_s18, 128, %s2816_s4, %s2819_s19, %s3130_s11, %s3130_s11, %s3129_s2  }
  0xe1   : > { %p3131_p7 = scmp.ne.s32.totalorder %s3114_s8, 0 }
  0xe2   : > { %s2851_s3 = sand.u32 (!%p3131_p7), 1, %s2487_s25  }
  0xe3   : > { %350 = sbr.rel (%p3131_p7) target bundleno = 1961 (0x7a9), region = 48  ;;  %s2854_s15 = sshll.u32 (!%p3131_p7), %s2851_s3, 3 }
  0xe4   : > { %s353_s13 = scalar_lea.sflag (!%p3131_p7), [#allocation6], %s2851_s3  ;;  %s356_s9 = scalar_lea.vmem (!%p3131_p7), [#allocation5], %s2854_s15 }
  0xea   : > { %2458 = dma.done.wait (%p2743_p6), %s353_s13, 128  }
  0xeb   : > { %2460 = vsyncadd (%p2743_p6), %s353_s13, 4294967168  ;;  %s361_s4 = sand.u32 1, %s2595_s30   ;;  %s365_s18 = scalar_lea.vmem [#allocation8], %s2854_s15 }
  0xec   : > { %s362_s8 = scalar_lea.sflag [#allocation9], %s361_s4 }
  0xed   : > { %2462 = dma.done.wait (%p2743_p6), %s362_s8, 128  }
  0xee   : > { %2464 = vsyncadd (%p2743_p6), %s362_s8, 4294967168  ;;  %p3132_p5 = scmp.eq.s32.totalorder %s2595_s30, 0 }
  0xf0   : > { %2466 = dma.done.wait (%p3132_p5), [#allocation9], 16   ;;  %p3133_p4 = pmov %p3132_p5 }
  0xf2   : > { %2468 = vsyncadd (%p3133_p4), [#allocation9], 4294967280  ;;  %p3134_p8 = pmov %p3133_p4 }
  0xf3   : > { %p3135_p9 = pmov %p3133_p4 }
  0xf4   : > { %2470 = dma.done.wait (%p3134_p8), [#allocation12], 3088  }
  0xf5   : > { %2472 = vsyncadd (%p3135_p9), [#allocation12], 4294964208  ;;  %p3136_p1 = pmov %p3133_p4 }
  0xf7   : > { %2474 = dma.done.wait (%p3136_p1), [#allocation15], 1040   ;;  %p3137_p3 = pmov %p3136_p1 }
  0xf8   : > { %v1847_v0 = vld [vmem:[%s365_s18] sm:$0xff]   ;;  %v1851_v1 = vld [vmem:[%s356_s9] sm:$0xff]   ;;  %v2516_v9 = vmov 0.0   ;;  %v2517_v41 = vmov 0   ;;  %vm2518_vm0 = vmmov 0   ;;  %vm615_vm1 = vcmask 261120  }
  0xf9   : > { %2476 = vsyncadd (%p3137_p3), [#allocation15], 4294966256  ;;  %v1848_v2 = vunpack.c.l.bf16 %v1847_v0  ;;  %v2880_v3 = vunpack.c.l.bf16 %v1851_v1  ;;  %v1849_v4 = vunpack.c.h.bf16 %v1847_v0  ;;  %v2883_v5 = vunpack.c.h.bf16 %v1851_v1  ;;  %v2125_v6 = vld [vmem:[#allocation13 + $0x8] ss:$12 sps:$4 sm:$0xff]   ;;  %v2127_v7 = vld [vmem:[#allocation13 + $0x4] ss:$12 sps:$4 sm:$0xff]   ;;  %1896 = vmatprep.subr.bf16.mxu1 %v2516_v9  ;;  %602 = vmatprep.mubr.bf16.mxu0 %v2517_v41 }
  0xfa   : > { %v2128_v8 = vld [vmem:[#allocation13 + $0x20] ss:$12 sps:$4 sm:$0xff]   ;;  %570 = vmatprep.subr.bf16.mxu0 %v2125_v6  ;;  %v2130_v26 = vld [vmem:[#allocation13 + $0x1c] ss:$12 sps:$4 sm:$0xff]   ;;  %v2132_v28 = vld [vmem:[#allocation13 + $0x38] ss:$12 sps:$4 sm:$0xff]   ;;  %1912 = vmatprep.mubr.msk.bf16.mxu1 %vm2518_vm0, %v2516_v9 }
  0xfb   : > { %434 = vadd.xlane.f32.xlu0 %v1848_v2  ;;  %656 = vadd.xlane.f32.xlu1 %v2880_v3  ;;  %v2131_v27 = vld [vmem:[#allocation13] ss:$12 sps:$4 sm:$0xff]   ;;  %v2135_v30 = vld [vmem:[#allocation13 + $0x18] ss:$12 sps:$4 sm:$0xff]   ;;  %v2136_v31 = vld [vmem:[#allocation13 + $0x50] ss:$12 sps:$4 sm:$0xff]  }
  0xfc   : > { %571 = vmatpush1.bf16.msra.mxu0 %v2127_v7  ;;  %1897 = vmatpush3.bf16.msra.mxu1 %v2131_v27  ;;  %v2134_v29 = vld [vmem:[#allocation13 + $0x34] ss:$12 sps:$4 sm:$0xff]   ;;  %v2138_v32 = vld [vmem:[#allocation13 + $0x4c] ss:$12 sps:$4 sm:$0xff]   ;;  %v2139_v33 = vld [vmem:[#allocation13 + $0x30] ss:$12 sps:$4 sm:$0xff]  }
  0xfd   : > { %572 = vmatprep.subr.bf16.mxu0 %v2128_v8  ;;  %1898 = vmatprep.subr.bf16.mxu1 %v2516_v9  ;;  %v2140_v34 = vld [vmem:[#allocation13 + $0x68] ss:$12 sps:$4 sm:$0xff]   ;;  %v2142_v35 = vld [vmem:[#allocation13 + $0x64] ss:$12 sps:$4 sm:$0xff]   ;;  %v2144_v37 = vld [vmem:[#allocation13 + $0x80] ss:$12 sps:$4 sm:$0xff]  }
  0xfe   : > { %v2143_v36 = vld [vmem:[#allocation13 + $0x48] ss:$12 sps:$4 sm:$0xff]   ;;  %v2147_v39 = vld [vmem:[#allocation13 + $0x60] ss:$12 sps:$4 sm:$0xff]   ;;  %v2148_v40 = vld [vmem:[#allocation13 + $0x98] ss:$12 sps:$4 sm:$0xff]  }
  0xff   : > { %436 = vadd.xlane.f32.xlu0 %v1849_v4  ;;  %658 = vadd.xlane.f32.xlu1 %v2883_v5  ;;  %v2146_v38 = vld [vmem:[#allocation13 + $0x7c] ss:$12 sps:$4 sm:$0xff]   ;;  %v2150_v42 = vld [vmem:[#allocation13 + $0x94] ss:$12 sps:$4 sm:$0xff]   ;;  %v2151_v43 = vld [vmem:[#allocation13 + $0x78] ss:$12 sps:$4 sm:$0xff]  }
 0x100   : > { %573 = vmatpush1.bf16.msra.mxu0 %v2130_v26  ;;  %1899 = vmatpush3.bf16.msra.mxu1 %v2135_v30  ;;  %v2152_v44 = vld [vmem:[#allocation13 + $0xb0] ss:$12 sps:$4 sm:$0xff]   ;;  %v2154_v45 = vld [vmem:[#allocation13 + $0xac] ss:$12 sps:$4 sm:$0xff]   ;;  %v2156_v47 = vld [vmem:[#allocation13 + $0xa8] ss:$12 sps:$4 sm:$0xff]  }
 0x101   : > { %574 = vmatprep.subr.bf16.mxu0 %v2132_v28  ;;  %1900 = vmatprep.subr.bf16.mxu1 %v2516_v9  ;;  %v2155_v46 = vld [vmem:[#allocation13 + $0x90] ss:$12 sps:$4 sm:$0xff]   ;;  %s2519_s30 = smov 64   ;;  %s2520_s17 = smov 96   ;;  %vm1047_vm3 = vcmask 130048  }
 0x102   : > { %v1785_v62 = vld [vmem:[#allocation10] ss:$0 sm:$0xff]  ;;  %s2521_s2 = smov 32   ;;  %s1845_s11 = sshll.u32 %s2495_s27, 7 }
 0x103   : > { %s420_s19 = scalar_lea.vmem [#allocation17], %s2854_s15  ;;  %s3040_s5 = scalar_lea.hbm %s3100_s7, %s1845_s11 }
 0x104   : > { %575 = vmatpush1.bf16.msra.mxu0 %v2134_v29  ;;  %1901 = vmatpush3.bf16.msra.mxu1 %v2139_v33  ;;  %s1604_s6 = sshll.u32 %s420_s19, 4  ;;  %s1589_s16 = scalar_lea.sflag [#allocation7], %s2851_s3  ;;  %s3042_s6 = int_to_ptr.vmem [resolvable:$true] %s1604_s6 }
 0x105   : > { %576 = vmatprep.subr.bf16.mxu0 %v2136_v31  ;;  %1902 = vmatprep.subr.bf16.mxu1 %v2516_v9  ;;  %s2405_s27 = scalar_lea.vmem %s3042_s6, 128  ;;  %p3138_p10 = scmp.ne.s32.totalorder %s3125_s20, 0 }
 0x106   : > { %p2406_p6 = scmp.ne.s32.totalorder %s3042_s6, %s2405_s27  ;;  %s2522_s21 = smov [#allocation17]  }
 0x107   : > { %s2409_s0 = sshll.u32 %s2522_s21, 4  ;;  %s2410_s0 = int_to_ptr.vmem [resolvable:$false] %s2409_s0 }
 0x108   : > { %577 = vmatpush1.bf16.msra.mxu0 %v2138_v32  ;;  %1903 = vmatpush3.bf16.msra.mxu1 %v2143_v36  ;;  %p2407_p13 = pnand %p2406_p6, %p3138_p10  ;;  %s2411_s15 = scalar_lea.vmem %s2410_s0, 256 }
 0x109   : > { %578 = vmatprep.subr.bf16.mxu0 %v2140_v34  ;;  %1904 = vmatprep.subr.bf16.mxu1 %v2516_v9  ;;  %p2412_p11 = scmp.lt.s32.totalorder %s3042_s6, %s2410_s0  ;;  %p2413_p12 = scmp.lt.s32.totalorder %s2411_s15, %s2405_s27 }
 0x10a   : > { %p2408_p2 = pneg %p2407_p13 }
 0x10b   : > { %p2414_p0 = por %p2413_p12, %p2412_p11 }
 0x10c   : > { %579 = vmatpush1.bf16.msra.mxu0 %v2142_v35  ;;  %1905 = vmatpush3.bf16.msra.mxu1 %v2147_v39 }
 0x10d   : > { %580 = vmatprep.subr.bf16.mxu0 %v2144_v37  ;;  %1906 = vmatprep.subr.bf16.mxu1 %v2516_v9  ;;  %p2415_p7 = pnand %p2414_p0, %p2408_p2 }
 0x110   : > { %581 = vmatpush1.bf16.msra.mxu0 %v2146_v38  ;;  %1907 = vmatpush3.bf16.msra.mxu1 %v2151_v43 }
 0x111   : > { %582 = vmatprep.subr.bf16.mxu0 %v2148_v40  ;;  %1908 = vmatprep.subr.bf16.mxu1 %v2516_v9 }
 0x114   : > { %583 = vmatpush1.bf16.msra.mxu0 %v2150_v42  ;;  %1909 = vmatpush3.bf16.msra.mxu1 %v2155_v46 }
 0x115   : > { %584 = vmatprep.subr.bf16.mxu0 %v2152_v44  ;;  %1910 = vmatprep.subr.bf16.mxu1 %v2516_v9 }
 0x118   : > { %585 = vmatpush1.bf16.msra.mxu0 %v2154_v45  ;;  %1911 = vmatpush3.bf16.msra.mxu1 %v2156_v47 }
 0x119   : > { %1916 = vmatprep.subr.bf16.mxu0 %v2516_v9  ;;  %1922 = vmatprep.subr.bf16.mxu1 %v2516_v9 }
 0x188   : > { %v435_v10 = vpop.xlane.xlu0 %434  ;;  %v657_v11 = vpop.xlane.xlu1 %656 }
 0x189   : > { %v439_v12 = vmul.f32 0.0078125, %v435_v10  ;;  %v661_v13 = vmul.f32 0.0078125, %v657_v11 }
 0x18b   : > { %v2887_v14 = vsub.f32 %v1848_v2, %v439_v12  ;;  %v2890_v15 = vsub.f32 %v2880_v3, %v661_v13 }
 0x18c   : > { %v437_v16 = vpop.xlane.xlu0 %436  ;;  %v659_v17 = vpop.xlane.xlu1 %658 }
 0x18d   : > { %v440_v18 = vmul.f32 0.0078125, %v437_v16  ;;  %v443_v19 = vmul.f32 %v2887_v14, %v2887_v14  ;;  %v662_v20 = vmul.f32 0.0078125, %v659_v17  ;;  %v665_v23 = vmul.f32 %v2890_v15, %v2890_v15 }
 0x18f   : > { %v2894_v21 = vsub.f32 %v1849_v4, %v440_v18  ;;  %445 = vadd.xlane.f32.xlu0 %v443_v19  ;;  %v2897_v22 = vsub.f32 %v2883_v5, %v662_v20  ;;  %v1786_v4 = vld [vmem:[#allocation11] ss:$0 sm:$0xff] }
 0x191   : > { %v444_v24 = vmul.f32 %v2894_v21, %v2894_v21  ;;  %v666_v25 = vmul.f32 %v2897_v22, %v2897_v22 }
 0x193   : > { %667 = vadd.xlane.f32.xlu0 %v665_v23  ;;  %447 = vadd.xlane.f32.xlu1 %v444_v24 }
 0x197   : > { %669 = vadd.xlane.f32.xlu1 %v666_v25 }
 0x21c   : > { %v446_v48 = vpop.xlane.xlu0 %445 }
 0x21d   : > { %v449_v49 = vmul.f32 0.0078125, %v446_v48 }
 0x21f   : > { %v451_v50 = vadd.f32 1e-05, %v449_v49  ;;  %v1028_v49 = vlaneseq }
 0x220   : > { %v448_v51 = vpop.xlane.xlu1 %447  ;;  %v668_v52 = vpop.xlane.xlu0 %667 }
 0x221   : > { %2165 = vrsqrt.f32 %v451_v50  ;;  %v450_v53 = vmul.f32 0.0078125, %v448_v51  ;;  %v671_v54 = vmul.f32 0.0078125, %v668_v52  ;;  %v1029_v50 = vshrl.u32 %v1028_v49, 7 }
 0x222   : > { %v1036_v51 = vand.u32 127, %v1028_v49 }
 0x223   : > { %v452_v55 = vadd.f32 1e-05, %v450_v53  ;;  %v673_v56 = vadd.f32 1e-05, %v671_v54  ;;  %v1030_v52 = vadd.s32 8, %v1029_v50 }
 0x224   : > { %v670_v57 = vpop.xlane.xlu1 %669  ;;  %vm1037_vm2 = vcmp.ge.s32.totalorder %v1029_v50, %v1036_v51 }
 0x225   : > { %2167 = vrsqrt.f32 %v452_v55  ;;  %v672_v58 = vmul.f32 0.0078125, %v670_v57  ;;  %vm1038_vm4 = vcmp.ge.s32.totalorder %v1030_v52, %v1036_v51 }
 0x226   : > { %2169 = vrsqrt.f32 %v673_v56 }
 0x227   : > { %v674_v59 = vadd.f32 1e-05, %v672_v58 }
 0x229   : > { %2171 = vrsqrt.f32 %v674_v59 }
 0x22b   : > { %v2166_v60 = vpop.eup %2165 }
 0x22c   : > { %v455_v61 = vmul.f32 %v2166_v60, %v2887_v14 }
 0x22e   : > { %v463_v2 = vmul.f32 %v1785_v62, %v455_v61 }
 0x22f   : > { %v2168_v63 = vpop.eup %2167 }
 0x230   : > { %v2170_v0 = vpop.eup %2169  ;;  %v456_v1 = vmul.f32 %v2168_v63, %v2894_v21  ;;  %v471_v10 = vadd.f32 %v1786_v4, %v463_v2 }
 0x231   : > { %v677_v6 = vmul.f32 %v2170_v0, %v2890_v15 }
 0x232   : > { %v464_v7 = vmul.f32 %v1785_v62, %v456_v1 }
 0x233   : > { %v2172_v8 = vpop.eup %2171  ;;  %v685_v13 = vmul.f32 %v1785_v62, %v677_v6 }
 0x234   : > { %v472_v11 = vadd.f32 %v1786_v4, %v464_v7  ;;  %v678_v12 = vmul.f32 %v2172_v8, %v2897_v22 }
 0x235   : > { %v693_v14 = vadd.f32 %v1786_v4, %v685_v13 }
 0x236   : > { %v473_v16 = vpack.c.bf16 %v472_v11, %v471_v10  ;;  %v686_v17 = vmul.f32 %v1785_v62, %v678_v12 }
 0x238   : > { %603 = vmatmul.mubr.bf16.vlgmr.msra.gmra.mrb[0].mxu0 %v473_v16  ;;  %v694_v18 = vadd.f32 %v1786_v4, %v686_v17 }
 0x239   : > { %1918 = vmatprep.mubr.msk.bf16.mxu0 %vm2518_vm0, %v2516_v9 }
 0x23a   : > { %v695_v19 = vpack.c.bf16 %v694_v18, %v693_v14 }
 0x23c   : > { %1913 = vmatmul.mubr.bf16.vlgmr.msra.gmra.mrb[0].mxu1 %v695_v19 }
 0x23d   : > { %1924 = vmatprep.mubr.msk.bf16.mxu1 %vm2518_vm0, %v2516_v9 }
 0x30b   : > { %v604_v15 = vpop.f32.mrb[0].mxu0 }
 0x30c   : > { %v606_v20 = vpop.f32.mrb[1].mxu0 }
 0x30d   : > { %v608_v21 = vpop.f32.mrb[2].mxu0 }
 0x30e   : > { %v613_v23 = vpack.c.bf16 %v608_v21, %v604_v15  ;;  %v610_v22 = vpop.f32.mrb[3].mxu0 }
 0x30f   : > { %v2924_v24 = vpack.c.bf16 %v610_v22, %v606_v20  ;;  %v794_v25 = vpop.f32.mrb[0].mxu1 }
 0x310   : > { %616 = vst.msk [vmem:[#allocation3] sm:$0xff] %vm615_vm1, %v613_v23  ;;  %630 = vrot.lane.b32.xlu1 %v613_v23, %s2519_s30  ;;  %619 = vrot.lane.b32.xlu0 %v613_v23, %s2520_s17  ;;  %v1914_v26 = vpop.f32.mrb[1].mxu1 }
 0x311   : > { %617 = vst.msk [vmem:[#allocation4] sm:$0xff] %vm615_vm1, %v2924_v24  ;;  %v797_v27 = vpop.f32.mrb[2].mxu1 }
 0x312   : > { %v801_v28 = vpack.c.bf16 %v797_v27, %v794_v25  ;;  %v1915_v29 = vpop.f32.mrb[3].mxu1 }
 0x314   : > { %803 = vst.msk [vmem:[#allocation2] sm:$0xff] %vm615_vm1, %v801_v28  ;;  %810 = vrot.lane.b32.xlu0 %v801_v28, %s2519_s30  ;;  %805 = vrot.lane.b32.xlu1 %v801_v28, %s2520_s17 }
 0x317   : > { %v824_v30 = vld [vmem:[#allocation3] sm:$0xff] }
 0x318   : > { %640 = vrot.lane.b32.xlu1 %v613_v23, %s2521_s2  ;;  %v836_v31 = vsel %vm615_vm1, %v824_v30, 0  ;;  %v828_v47 = vld [vmem:[#allocation4] sm:$0xff] }
 0x319   : > { %1917 = vmatpush3.bf16.xpose.msra.mxu0 %v836_v31 }
 0x31a   : > { %1928 = vmatprep.subr.bf16.mxu0 %v2516_v9 }
 0x31b   : > { %v820_v32 = vld [vmem:[#allocation2] sm:$0xff] }
 0x31c   : > { %815 = vrot.lane.b32.xlu1 %v801_v28, %s2521_s2 }
 0x320   : > { %1919 = vmatmul.mubr.msk.bf16.vlgmr.msra.gmra.mrb[4].mxu0 %vm615_vm1, %v820_v32 }
 0x321   : > { %1930 = vmatprep.mubr.msk.bf16.mxu0 %vm2518_vm0, %v2516_v9 }
 0x382   : > { %v631_v33 = vpop.permute.xlu1 %630  ;;  %v620_v34 = vpop.permute.xlu0 %619 }
 0x383   : > { %634 = vst.msk [vmem:[#allocation3 + $0x10] sm:$0xff] %vm615_vm1, %v631_v33  ;;  %623 = vst.msk [vmem:[#allocation3 + $0x8] sm:$0xff] %vm615_vm1, %v620_v34 }
 0x386   : > { %v806_v35 = vpop.permute.xlu1 %805  ;;  %v811_v36 = vpop.permute.xlu0 %810 }
 0x387   : > { %809 = vst.msk [vmem:[#allocation2 + $0x8] sm:$0xff] %vm615_vm1, %v806_v35  ;;  %814 = vst.msk [vmem:[#allocation2 + $0x10] sm:$0xff] %vm615_vm1, %v811_v36 }
 0x38a   : > { %v641_v37 = vpop.permute.xlu1 %640  ;;  %v825_v38 = vld [vmem:[#allocation3 + $0x8] sm:$0xff]  ;;  %v826_v39 = vld [vmem:[#allocation3 + $0x10] sm:$0xff] }
 0x38b   : > { %644 = vst.msk [vmem:[#allocation3 + $0x18] sm:$0xff] %vm615_vm1, %v641_v37  ;;  %v883_v40 = vsel %vm615_vm1, %v825_v38, 0  ;;  %v930_v41 = vsel %vm615_vm1, %v826_v39, 0 }
 0x38c   : > { %1923 = vmatpush3.bf16.xpose.msra.mxu1 %v883_v40  ;;  %1929 = vmatpush3.bf16.xpose.msra.mxu0 %v930_v41 }
 0x38d   : > { %1934 = vmatprep.subr.bf16.mxu1 %v2516_v9  ;;  %1940 = vmatprep.subr.bf16.mxu0 %v2516_v9 }
 0x38e   : > { %v816_v42 = vpop.permute.xlu1 %815  ;;  %v821_v43 = vld [vmem:[#allocation2 + $0x8] sm:$0xff]  ;;  %v822_v44 = vld [vmem:[#allocation2 + $0x10] sm:$0xff] }
 0x38f   : > { %819 = vst.msk [vmem:[#allocation2 + $0x18] sm:$0xff] %vm615_vm1, %v816_v42 }
 0x392   : > { %v827_v45 = vld [vmem:[#allocation3 + $0x18] sm:$0xff] }
 0x393   : > { %1925 = vmatmul.mubr.msk.bf16.vlgmr.msra.gmra.mrb[4].mxu1 %vm615_vm1, %v821_v43  ;;  %1931 = vmatmul.mubr.msk.bf16.vlgmr.msra.gmra.mrb[8].mxu0 %vm615_vm1, %v822_v44  ;;  %v977_v46 = vsel %vm615_vm1, %v827_v45, 0 }
 0x394   : > { %1935 = vmatpush3.bf16.xpose.msra.mxu1 %v977_v46  ;;  %1941 = vmatpush3.bf16.msra.mxu0 %v828_v47 }
 0x395   : > { %1936 = vmatprep.mubr.msk.bf16.mxu1 %vm2518_vm0, %v2516_v9  ;;  %1942 = vmatprep.mubr.msk.bf16.mxu0 %vm2518_vm0, %v2516_v9 }
 0x396   : > { %1952 = vmatprep.subr.bf16.mxu0 %v2516_v9  ;;  %1946 = vmatprep.subr.bf16.mxu1 %v2516_v9  ;;  %v823_v48 = vld [vmem:[#allocation2 + $0x18] sm:$0xff] }
 0x39b   : > { %1937 = vmatmul.mubr.msk.bf16.vlgmr.msra.gmra.mrb[8].mxu1 %vm615_vm1, %v823_v48 }
 0x39c   : > { %1948 = vmatprep.mubr.msk.bf16.mxu1 %vm2518_vm0, %v2516_v9 }
 0x3f3   : > { %v872_v53 = vpop.f32.mrb[4].mxu0 }
 0x3f4   : > { %v1020_v54 = vmul.f32 0.17677669, %v872_v53  ;;  %v1920_v55 = vpop.f32.mrb[5].mxu0 }
 0x3f5   : > { %v875_v56 = vpop.f32.mrb[6].mxu0 }
 0x3f6   : > { %v1021_v57 = vmul.f32 0.17677669, %v875_v56  ;;  %v1921_v58 = vpop.f32.mrb[7].mxu0  ;;  %v1039_v59 = vsel %vm1037_vm2, %v1020_v54, -1e+30 }
 0x3f7   : > { %v1048_v60 = vsel %vm1047_vm3, %v1039_v59, -inf }
 0x3f8   : > { %1049 = vmax.xlane.f32.xlu0 %v1048_v60  ;;  %v1040_v61 = vsel %vm1038_vm4, %v1021_v57, -1e+30 }
 0x3f9   : > { %v1051_v62 = vsel %vm1047_vm3, %v1040_v61, -inf }
 0x3fa   : > { %1052 = vmax.xlane.f32.xlu1 %v1051_v62 }
 0x466   : > { %v919_v63 = vpop.f32.mrb[4].mxu1  ;;  %v966_v0 = vpop.f32.mrb[8].mxu0 }
 0x467   : > { %v1022_v1 = vmul.f32 0.17677669, %v919_v63  ;;  %v1926_v2 = vpop.f32.mrb[5].mxu1  ;;  %v1932_v4 = vpop.f32.mrb[9].mxu0  ;;  %v1024_v14 = vmul.f32 0.17677669, %v966_v0 }
 0x468   : > { %v922_v6 = vpop.f32.mrb[6].mxu1  ;;  %v969_v7 = vpop.f32.mrb[10].mxu0 }
 0x469   : > { %v1023_v8 = vmul.f32 0.17677669, %v922_v6  ;;  %v1025_v10 = vmul.f32 0.17677669, %v969_v7  ;;  %v1927_v11 = vpop.f32.mrb[7].mxu1  ;;  %v1933_v12 = vpop.f32.mrb[11].mxu0 }
 0x46a   : > { %v1041_v13 = vsel %vm1037_vm2, %v1022_v1, -1e+30  ;;  %v1043_v25 = vsel %vm1037_vm2, %v1024_v14, -1e+30 }
 0x46b   : > { %v1054_v16 = vsel %vm1047_vm3, %v1041_v13, -inf  ;;  %v1044_v17 = vsel %vm1038_vm4, %v1025_v10, -1e+30  ;;  %v1042_v19 = vsel %vm1038_vm4, %v1023_v8, -1e+30  ;;  %v1060_v28 = vsel %vm1047_vm3, %v1043_v25, -inf }
 0x46c   : > { %1055 = vmax.xlane.f32.xlu0 %v1054_v16  ;;  %v1063_v18 = vsel %vm1047_vm3, %v1044_v17, -inf  ;;  %v1057_v20 = vsel %vm1047_vm3, %v1042_v19, -inf }
 0x46d   : > { %1064 = vmax.xlane.f32.xlu1 %v1063_v18 }
 0x46e   : > { %v1013_v15 = vpop.f32.mrb[8].mxu1 }
 0x46f   : > { %v1938_v21 = vpop.f32.mrb[9].mxu1  ;;  %v1026_v23 = vmul.f32 0.17677669, %v1013_v15 }
 0x470   : > { %1058 = vmax.xlane.f32.xlu0 %v1057_v20  ;;  %v1016_v22 = vpop.f32.mrb[10].mxu1 }
 0x471   : > { %v1027_v26 = vmul.f32 0.17677669, %v1016_v22  ;;  %v1939_v27 = vpop.f32.mrb[11].mxu1  ;;  %v1045_v31 = vsel %vm1037_vm2, %v1026_v23, -1e+30 }
 0x472   : > { %v1066_v32 = vsel %vm1047_vm3, %v1045_v31, -inf }
 0x473   : > { %v2976_v29 = vsel %vm1038_vm4, %v1027_v26, -1e+30 }
 0x474   : > { %1061 = vmax.xlane.f32.xlu0 %v1060_v28  ;;  %v1069_v30 = vsel %vm1047_vm3, %v2976_v29, -inf }
 0x475   : > { %1070 = vmax.xlane.f32.xlu1 %v1069_v30 }
 0x478   : > { %1067 = vmax.xlane.f32.xlu0 %v1066_v32 }
 0x485   : > { %v1050_v33 = vpop.xlane.xlu0 %1049 }
 0x486   : > { %v1072_v34 = vsub.f32 %v1039_v59, %v1050_v33 }
 0x487   : > { %v1053_v35 = vpop.xlane.xlu1 %1052 }
 0x488   : > { %v1080_v36 = vmul.f32 1.442695, %v1072_v34  ;;  %v1073_v37 = vsub.f32 %v1040_v61, %v1053_v35 }
 0x48a   : > { %2173 = vpow2.f32 %v1080_v36  ;;  %v1082_v38 = vmul.f32 1.442695, %v1073_v37 }
 0x48c   : > { %2175 = vpow2.f32 %v1082_v38 }
 0x494   : > { %v2174_v39 = vpop.eup %2173 }
 0x495   : > { %v1096_v40 = vsel %vm1047_vm3, %v2174_v39, 0.0 }
 0x496   : > { %v2176_v41 = vpop.eup %2175  ;;  %1097 = vadd.xlane.f32.xlu0 %v1096_v40 }
 0x497   : > { %v1099_v42 = vsel %vm1047_vm3, %v2176_v41, 0.0 }
 0x498   : > { %1100 = vadd.xlane.f32.xlu1 %v1099_v42 }
 0x4f9   : > { %v1056_v43 = vpop.xlane.xlu0 %1055 }
 0x4fa   : > { %v1074_v44 = vsub.f32 %v1041_v13, %v1056_v43  ;;  %v1065_v45 = vpop.xlane.xlu1 %1064 }
 0x4fb   : > { %v1077_v47 = vsub.f32 %v1044_v17, %v1065_v45  ;;  %v2157_v45 = vld [vmem:[#allocation14] sm:$0xff]  }
 0x4fc   : > { %v1084_v46 = vmul.f32 1.442695, %v1074_v44 }
 0x4fd   : > { %v1059_v48 = vpop.xlane.xlu0 %1058  ;;  %v1090_v50 = vmul.f32 1.442695, %v1077_v47  ;;  %v2158_v47 = vld [vmem:[#allocation14 + $0x8] sm:$0xff]  }
 0x4fe   : > { %2177 = vpow2.f32 %v1084_v46  ;;  %v1075_v49 = vsub.f32 %v1042_v19, %v1059_v48  ;;  %v2159_v48 = vld [vmem:[#allocation14 + $0x10] sm:$0xff]  }
 0x500   : > { %v1086_v51 = vmul.f32 1.442695, %v1075_v49  ;;  %v2160_v49 = vld [vmem:[#allocation14 + $0x18] sm:$0xff]  }
 0x501   : > { %v1062_v52 = vpop.xlane.xlu0 %1061 }
 0x502   : > { %2179 = vpow2.f32 %v1086_v51  ;;  %v1076_v53 = vsub.f32 %v1043_v25, %v1062_v52  ;;  %v1071_v6 = vpop.xlane.xlu1 %1070 }
 0x503   : > { %2181 = vpow2.f32 %v1090_v50  ;;  %v1079_v12 = vsub.f32 %v2976_v29, %v1071_v6  ;;  %v2162_v6 = vld [vmem:[#allocation14 + $0x28] sm:$0xff]  }
 0x504   : > { %v1088_v54 = vmul.f32 1.442695, %v1076_v53 }
 0x505   : > { %v1068_v55 = vpop.xlane.xlu0 %1067  ;;  %v1094_v14 = vmul.f32 1.442695, %v1079_v12 }
 0x506   : > { %2183 = vpow2.f32 %v1088_v54  ;;  %v1078_v56 = vsub.f32 %v1045_v31, %v1068_v55  ;;  %v2163_v55 = vld [vmem:[#allocation14 + $0x30] sm:$0xff]  }
 0x508   : > { %v2178_v57 = vpop.eup %2177  ;;  %v1092_v58 = vmul.f32 1.442695, %v1078_v56  ;;  %v2164_v56 = vld [vmem:[#allocation14 + $0x38] sm:$0xff]  }
 0x509   : > { %v1102_v59 = vsel %vm1047_vm3, %v2178_v57, 0.0 }
 0x50a   : > { %2185 = vpow2.f32 %v1092_v58  ;;  %1103 = vadd.xlane.f32.xlu0 %v1102_v59 }
 0x50c   : > { %v2180_v60 = vpop.eup %2179 }
 0x50d   : > { %v1105_v61 = vsel %vm1047_vm3, %v2180_v60, 0.0  ;;  %v2182_v62 = vpop.eup %2181 }
 0x50e   : > { %1106 = vadd.xlane.f32.xlu1 %v1105_v61  ;;  %v1111_v0 = vsel %vm1047_vm3, %v2182_v62, 0.0 }
 0x510   : > { %v2184_v63 = vpop.eup %2183 }
 0x511   : > { %v1108_v1 = vsel %vm1047_vm3, %v2184_v63, 0.0 }
 0x512   : > { %1112 = vadd.xlane.f32.xlu1 %v1111_v0  ;;  %1109 = vadd.xlane.f32.xlu0 %v1108_v1  ;;  %v2161_v1 = vld [vmem:[#allocation14 + $0x20] sm:$0xff]  }
 0x514   : > { %v2988_v2 = vpop.eup %2185 }
 0x515   : > { %v1114_v4 = vsel %vm1047_vm3, %v2988_v2, 0.0 }
 0x516   : > { %1115 = vadd.xlane.f32.xlu0 %v1114_v4 }
 0x523   : > { %635 = vrot.lane.b32.xlu1 %v2924_v24, %s2519_s30  ;;  %v1098_v7 = vpop.xlane.xlu0 %1097 }
 0x524   : > { %2187 = vrcp.f32 %v1098_v7 }
 0x525   : > { %v1101_v8 = vpop.xlane.xlu1 %1100 }
 0x526   : > { %2189 = vrcp.f32 %v1101_v8 }
 0x527   : > { %2191 = vpow2.f32 %v1094_v14 }
 0x52c   : > { %625 = vrot.lane.b32.xlu0 %v2924_v24, %s2520_s17 }
 0x52e   : > { %v2188_v10 = vpop.eup %2187 }
 0x52f   : > { %v1121_v13 = vmul.f32 %v2188_v10, %v2174_v39 }
 0x530   : > { %v2190_v11 = vpop.eup %2189 }
 0x531   : > { %v1123_v16 = vmul.f32 %v2190_v11, %v2176_v41  ;;  %v2192_v18 = vpop.eup %2191 }
 0x532   : > { %v1117_v19 = vsel %vm1047_vm3, %v2192_v18, 0.0 }
 0x533   : > { %v1136_v17 = vpack.c.bf16 %v1123_v16, %v1121_v13 }
 0x535   : > { %1943 = vmatmul.mubr.msk.bf16.vlgmr.msra.gmra.mrb[12].mxu0 %vm1047_vm3, %v1136_v17 }
 0x536   : > { %1954 = vmatprep.mubr.msk.bf16.mxu0 %vm2518_vm0, %v2516_v9 }
 0x547   : > { %1118 = vadd.xlane.f32.xlu1 %v1117_v19 }
 0x558   : > { %645 = vrot.lane.b32.xlu1 %v2924_v24, %s2521_s2 }
 0x597   : > { %v1104_v15 = vpop.xlane.xlu0 %1103 }
 0x59b   : > { %v1107_v20 = vpop.xlane.xlu1 %1106 }
 0x59c   : > { %2193 = vrcp.f32 %v1107_v20 }
 0x59f   : > { %v1113_v21 = vpop.xlane.xlu1 %1112  ;;  %v1110_v23 = vpop.xlane.xlu0 %1109 }
 0x5a0   : > { %2195 = vrcp.f32 %v1113_v21 }
 0x5a1   : > { %2197 = vrcp.f32 %v1110_v23 }
 0x5a2   : > { %2199 = vrcp.f32 %v1104_v15 }
 0x5a3   : > { %v636_v22 = vpop.permute.xlu1 %635  ;;  %v1116_v25 = vpop.xlane.xlu0 %1115 }
 0x5a4   : > { %639 = vst.msk [vmem:[#allocation4 + $0x10] sm:$0xff] %vm615_vm1, %v636_v22  ;;  %2201 = vrcp.f32 %v1116_v25 }
 0x5a6   : > { %v2194_v27 = vpop.eup %2193 }
 0x5a7   : > { %v626_v26 = vpop.permute.xlu0 %625  ;;  %v1127_v33 = vmul.f32 %v2194_v27, %v2180_v60 }
 0x5a8   : > { %629 = vst.msk [vmem:[#allocation4 + $0x8] sm:$0xff] %vm615_vm1, %v626_v26 }
 0x5aa   : > { %v2196_v28 = vpop.eup %2195 }
 0x5ab   : > { %v2198_v29 = vpop.eup %2197  ;;  %v1131_v30 = vmul.f32 %v2196_v28, %v2182_v62  ;;  %v830_v24 = vld [vmem:[#allocation4 + $0x10] sm:$0xff] }
 0x5ac   : > { %v2200_v31 = vpop.eup %2199  ;;  %v1129_v32 = vmul.f32 %v2198_v29, %v2184_v63  ;;  %1953 = vmatpush3.bf16.msra.mxu0 %v830_v24 }
 0x5ad   : > { %1964 = vmatprep.subr.bf16.mxu0 %v2516_v9  ;;  %v1125_v35 = vmul.f32 %v2200_v31, %v2178_v57 }
 0x5ae   : > { %v1138_v34 = vpack.c.bf16 %v1131_v30, %v1129_v32  ;;  %v2202_v40 = vpop.eup %2201  ;;  %v1833_v30 = vld [vmem:[#allocation16] ss:$0 sm:$0xff] }
 0x5af   : > { %v829_v36 = vld [vmem:[#allocation4 + $0x8] sm:$0xff]  ;;  %v1137_v37 = vpack.c.bf16 %v1127_v33, %v1125_v35  ;;  %v1133_v42 = vmul.f32 %v2202_v40, %v2988_v2 }
 0x5b0   : > { %1955 = vmatmul.mubr.msk.bf16.vlgmr.msra.gmra.mrb[16].mxu0 %vm1047_vm3, %v1138_v34  ;;  %1947 = vmatpush3.bf16.msra.mxu1 %v829_v36 }
 0x5b1   : > { %1958 = vmatprep.subr.bf16.mxu1 %v2516_v9  ;;  %1968 = vmatprep.mubr.msk.bf16.mxu0 %vm2518_vm0, %v2516_v9 }
 0x5b2   : > { %1965 = vmatpush3.bf16.msra.mxu0 %v2159_v48 }
 0x5b3   : > { %1949 = vmatmul.mubr.msk.bf16.vlgmr.msra.gmra.mrb[12].mxu1 %vm1047_vm3, %v1137_v37  ;;  %1966 = vmatprep.subr.bf16.mxu0 %v2516_v9 }
 0x5b4   : > { %1960 = vmatprep.mubr.msk.bf16.mxu1 %vm2518_vm0, %v2516_v9 }
 0x5b6   : > { %1967 = vmatpush3.bf16.msra.mxu0 %v2160_v49 }
 0x5b7   : > { %1980 = vmatprep.subr.bf16.mxu0 %v2516_v9 }
 0x5d4   : > { %v1119_v38 = vpop.xlane.xlu1 %1118 }
 0x5d5   : > { %2203 = vrcp.f32 %v1119_v38 }
 0x5d8   : > { %v646_v39 = vpop.permute.xlu1 %645 }
 0x5d9   : > { %649 = vst.msk [vmem:[#allocation4 + $0x18] sm:$0xff] %vm615_vm1, %v646_v39 }
 0x5df   : > { %v2204_v41 = vpop.eup %2203 }
 0x5e0   : > { %v1135_v43 = vmul.f32 %v2204_v41, %v2192_v18  ;;  %v831_v44 = vld [vmem:[#allocation4 + $0x18] sm:$0xff] }
 0x5e1   : > { %1959 = vmatpush3.bf16.msra.mxu1 %v831_v44 }
 0x5e2   : > { %v1139_v46 = vpack.c.bf16 %v1135_v43, %v1133_v42  ;;  %1972 = vmatprep.subr.bf16.mxu1 %v2516_v9 }
 0x5e4   : > { %1961 = vmatmul.mubr.msk.bf16.vlgmr.msra.gmra.mrb[16].mxu1 %vm1047_vm3, %v1139_v46 }
 0x5e5   : > { %1973 = vmatpush3.bf16.msra.mxu1 %v2157_v45  ;;  %1976 = vmatprep.mubr.msk.bf16.mxu1 %vm2518_vm0, %v2516_v9 }
 0x5e6   : > { %1974 = vmatprep.subr.bf16.mxu1 %v2516_v9 }
 0x5e9   : > { %1975 = vmatpush3.bf16.msra.mxu1 %v2158_v47 }
 0x5ea   : > { %1988 = vmatprep.subr.bf16.mxu1 %v2516_v9 }
 0x608   : > { %v1177_v50 = vpop.f32.mrb[12].mxu0 }
 0x609   : > { %v1944_v51 = vpop.f32.mrb[13].mxu0 }
 0x60a   : > { %v1180_v52 = vpop.f32.mrb[14].mxu0 }
 0x60b   : > { %v1316_v53 = vpack.c.bf16 %v1180_v52, %v1177_v50  ;;  %v1945_v54 = vpop.f32.mrb[15].mxu0 }
 0x60d   : > { %1977 = vmatmul.mubr.msk.bf16.vlgmr.msra.gmra.mrb[20].mxu1 %vm615_vm1, %v1316_v53 }
 0x60e   : > { %1992 = vmatprep.mubr.msk.bf16.mxu1 %vm2518_vm0, %v2516_v9  ;;  %1989 = vmatpush3.bf16.msra.mxu1 %v2163_v55 }
 0x60f   : > { %1990 = vmatprep.subr.bf16.mxu1 %v2516_v9 }
 0x612   : > { %1991 = vmatpush3.bf16.msra.mxu1 %v2164_v56 }
 0x683   : > { %v1265_v57 = vpop.f32.mrb[16].mxu0 }
 0x684   : > { %v1956_v58 = vpop.f32.mrb[17].mxu0 }
 0x685   : > { %v1268_v59 = vpop.f32.mrb[18].mxu0 }
 0x686   : > { %v1318_v60 = vpack.c.bf16 %v1268_v59, %v1265_v57  ;;  %v1957_v61 = vpop.f32.mrb[19].mxu0  ;;  %v1221_v62 = vpop.f32.mrb[12].mxu1 }
 0x687   : > { %v1950_v63 = vpop.f32.mrb[13].mxu1 }
 0x688   : > { %v1224_v0 = vpop.f32.mrb[14].mxu1 }
 0x689   : > { %v1317_v2 = vpack.c.bf16 %v1224_v0, %v1221_v62  ;;  %v1951_v4 = vpop.f32.mrb[15].mxu1 }
 0x68b   : > { %1969 = vmatmul.mubr.msk.bf16.vlgmr.msra.gmra.mrb[20].mxu0 %vm615_vm1, %v1317_v2 }
 0x68c   : > { %1981 = vmatpush3.bf16.msra.mxu0 %v2161_v1  ;;  %1984 = vmatprep.mubr.msk.bf16.mxu0 %vm2518_vm0, %v2516_v9 }
 0x68d   : > { %1982 = vmatprep.subr.bf16.mxu0 %v2516_v9 }
 0x690   : > { %1983 = vmatpush3.bf16.msra.mxu0 %v2162_v6 }
 0x693   : > { %1985 = vmatmul.mubr.msk.bf16.vlgmr.msra.gmra.mrb[24].mxu0 %vm615_vm1, %v1318_v60 }
 0x6b7   : > { %v1309_v7 = vpop.f32.mrb[16].mxu1 }
 0x6b8   : > { %v1962_v8 = vpop.f32.mrb[17].mxu1 }
 0x6b9   : > { %v1312_v10 = vpop.f32.mrb[18].mxu1 }
 0x6ba   : > { %v1319_v11 = vpack.c.bf16 %v1312_v10, %v1309_v7  ;;  %v1963_v12 = vpop.f32.mrb[19].mxu1 }
 0x6bc   : > { %1993 = vmatmul.mubr.msk.bf16.vlgmr.msra.gmra.mrb[24].mxu1 %vm615_vm1, %v1319_v11 }
 0x6e0   : > { %v1434_v13 = vpop.f32.mrb[20].mxu1 }
 0x6e1   : > { %v1978_v16 = vpop.f32.mrb[21].mxu1 }
 0x6e2   : > { %v1437_v17 = vpop.f32.mrb[22].mxu1 }
 0x6e3   : > { %v1979_v14 = vpop.f32.mrb[23].mxu1 }
 0x75e   : > { %v1378_v18 = vpop.f32.mrb[20].mxu0 }
 0x75f   : > { %v1435_v19 = vadd.f32 %v1434_v13, %v1378_v18  ;;  %v1970_v15 = vpop.f32.mrb[21].mxu0 }
 0x760   : > { %v1381_v20 = vpop.f32.mrb[22].mxu0 }
 0x761   : > { %v1438_v21 = vadd.f32 %v1437_v17, %v1381_v20  ;;  %v1971_v9 = vpop.f32.mrb[23].mxu0 }
 0x766   : > { %v1495_v23 = vpop.f32.mrb[24].mxu0 }
 0x767   : > { %v1502_v22 = vadd.f32 %v1495_v23, %v1435_v19  ;;  %v1986_v25 = vpop.f32.mrb[25].mxu0 }
 0x768   : > { %v1498_v26 = vpop.f32.mrb[26].mxu0 }
 0x769   : > { %v1503_v27 = vadd.f32 %v1498_v26, %v1438_v21  ;;  %v1987_v28 = vpop.f32.mrb[27].mxu0 }
 0x78f   : > { %v1558_v29 = vpop.f32.mrb[24].mxu1 }
 0x790   : > { %v1565_v24 = vadd.f32 %v1558_v29, %v1502_v22  ;;  %v1994_v31 = vpop.f32.mrb[25].mxu1 }
 0x791   : > { %v1561_v32 = vpop.f32.mrb[26].mxu1 }
 0x792   : > { %v1574_v33 = vadd.f32 %v1833_v30, %v1565_v24  ;;  %v1566_v34 = vadd.f32 %v1561_v32, %v1503_v27  ;;  %v1995_v35 = vpop.f32.mrb[27].mxu1 }
 0x794   : > { %v1575_v36 = vadd.f32 %v1833_v30, %v1566_v34  ;;  %v1576_v37 = vadd.f32 %v2880_v3, %v1574_v33 }
 0x796   : > { %v1577_v38 = vadd.f32 %v2883_v5, %v1575_v36 }
 0x798   : > { %v1857_v39 = vpack.c.bf16 %v1577_v38, %v1576_v37 }
 0x79a   : > { %1858 = vst [vmem:[%s420_s19] sm:$0xff] %v1857_v39  }
 0x79b   : > { %2418 = shalt.err (!%p2415_p7)
}
 0x79c   : > { %s2419_s13 = scalar_lea.hbm %s3040_s5, 128  ;;  %s2423_s8 = scalar_lea.hbm %s3100_s7, 256 }
 0x79d   : > { %p2420_p5 = scmp.ne.s32.totalorder %s3040_s5, %s2419_s13  ;;  %p2424_p9 = scmp.lt.u32.totalorder %s3040_s5, %s3100_s7 }
 0x79e   : > { %p2425_p1 = scmp.lt.u32.totalorder %s2423_s8, %s2419_s13  ;;  %p2427_p6 = scmp.lt.u32.totalorder %s2419_s13, %s3040_s5 }
 0x79f   : > { %p2421_p4 = pnand %p2420_p5, %p3138_p10 }
 0x7a0   : > { %p2426_p3 = por %p2425_p1, %p2424_p9 }
 0x7a1   : > { %p2422_p8 = pneg %p2421_p4 }
 0x7a2   : > { %p2428_p13 = por %p2427_p6, %p2426_p3 }
 0x7a4   : > { %p2429_p2 = pnand %p2428_p13, %p2422_p8 }
 0x7a6   : > { %2432 = shalt.err (!%p2429_p2)
}
 0x7a7   : > { %s2523_s2 = smov 4  }
 0x7a8   : > { %2020 = dma.vmem_to_hbm [thread:$0]  (%p3138_p10), %s3042_s6, 128, %s3040_s5, %s1589_s16, %s2519_s30, %s2519_s30, %s2523_s2  }
 0x7a9 PF: > { %s1619_s11 = sand.u32 1, %s2483_s24   ;;  %p3139_p11 = scmp.ne.s32.totalorder %s3126_s23, 0 }
 0x7aa   : > { %p3140_p12 = scmp.ge.s32.totalorder %s2503_s29, 2  ;;  %s1620_s19 = scalar_lea.sflag [#allocation7], %s1619_s11 }
 0x7ac   : > { %p2046_p0 = pnand %p3140_p12, %p3139_p11 }
 0x7ae   : > { %2478 = dma.done.wait (!%p2046_p0), %s1620_s19, 128  }
 0x7af   : > { %2480 = vsyncadd (!%p2046_p0), %s1620_s19, 4294967168  ;;  %s28_s29 = sadd.s32 1, %s2503_s29   ;;  %s3141_s24 = smov %s2487_s25 }
 0x7b0   : > { %p25_p7 = scmp.ge.s32.totalorder %s28_s29, 4   ;;  %s3142_s25 = smov %s2491_s26 }
 0x7b1   : > { %s3143_s26 = smov %s2756_s22  ;;  %s3144_s27 = smov %s2499_s28 }
 0x7b2   : > { %s3145_s28 = smov %s3147_s10  ;;  %27 = sbr.rel (!%p25_p7) target bundleno = 17 (0x11), region = 142 }
 0x7b9   :  { %1625 = vsyncpa [#allocation6], 1 }
 0x7ba   :  { %1627 = vsyncpa [#allocation6 + $0x1], 1 }
 0x7bb   :  { %1628 = vsyncpa [#allocation9], 1 }
 0x7bc   :  { %1630 = vsyncpa [#allocation9 + $0x1], 1 }
 0x7bd   :  { %1631 = vsyncpa [#allocation12], 1 }
 0x7be   :  { %1632 = vsyncpa [#allocation15], 1 }
 0x7bf   :  { %1633 = vsyncpa [#allocation7], 1 }
 0x7c0   :  { %1635 = vsyncpa [#allocation7 + $0x1], 1 }

</bundles_post_ra>
